<compile_context>
chip_gen: v7x
topology: tpu7x:2x2x1
jax: 0.10.0
libtpu: 0.0.40
codegen_flags: <defaults>
</compile_context>

<pallas_src>
import functools

import jax
import jax.numpy as jnp
from jax.experimental import pallas as pl
from jax.experimental.pallas import tpu as pltpu


# ---------------------------------------------------------------------------
# Fused Pallas kernel: 3x GCNConv + global_mean_pool + Linear
# ---------------------------------------------------------------------------

def gcn_fused_kernel(a_ref, x_ref, w_ref, b_ref, p_ref, wl_ref, bl_ref,
                     out_ref, acc_ref, h_ref, pool_ref, *,
                     n_pad, tile_m, tile_k, num_layers):
    """grid = (layer, row-tile i, k-tile) — k innermost reduction.

    a_ref : (tile_m, tile_k) bf16   A_hat tile, streamed from HBM
    x_ref : (n_pad, f_pad)   bf16   input features, VMEM-resident
    w_ref : (1, f_pad, f_pad) bf16  layer weight (indexed by layer)
    b_ref : (1, 1, f_pad)    f32    layer bias   (indexed by layer)
    p_ref : (g_pad, tile_m)  bf16   mean-pool columns for row tile i
    wl_ref: (f_pad, f_pad)   bf16   final Linear weight (resident)
    bl_ref: (1, f_pad)       f32    final Linear bias   (resident)
    h_ref : (2*n_pad, f_pad) bf16   ping-pong node features (scratch)
    acc_ref: (tile_m, f_pad) f32    A@H accumulator (scratch)
    pool_ref: (g_pad, f_pad) f32    pooled accumulator (scratch)
    """
    l = pl.program_id(0)           # layer (sequential dependence)
    i = pl.program_id(1)           # row tile of A_hat / H
    k = pl.program_id(2)           # reduction tile over N
    ni = pl.num_programs(1)
    nk = pl.num_programs(2)

    # One-time init: stage X into ping-pong half 0, clear pooled accumulator.
    @pl.when((l == 0) & (i == 0) & (k == 0))
    def _init():
        h_ref[pl.ds(0, n_pad), :] = x_ref[...]
        pool_ref[...] = jnp.zeros_like(pool_ref)

    # Ping-pong offsets: layer l reads half (l % 2), writes half (1 - l % 2).
    read_start = pl.multiple_of((l % 2) * n_pad + k * tile_k, tile_k)
    write_start = pl.multiple_of((1 - (l % 2)) * n_pad + i * tile_m, tile_m)

    # Dominant matmul: bf16 A tile @ resident bf16 H rows, f32 accumulate.
    prod = jnp.dot(a_ref[...], h_ref[pl.ds(read_start, tile_k), :],
                   preferred_element_type=jnp.float32)

    @pl.when(k == 0)
    def _store_first():            # skip zero-init + add on the first k step
        acc_ref[...] = prod

    @pl.when(k > 0)
    def _accumulate():
        acc_ref[...] += prod

    # Row-tile epilogue: (A @ H) @ W_l + b_l (+ ReLU on all but the last layer).
    @pl.when(k == nk - 1)
    def _epilogue():
        h_new = jnp.dot(acc_ref[...].astype(jnp.bfloat16), w_ref[0],
                        preferred_element_type=jnp.float32) + b_ref[0]
        h_new = jnp.where(l < num_layers - 1, jnp.maximum(h_new, 0.0), h_new)
        h_bf = h_new.astype(jnp.bfloat16)
        h_ref[pl.ds(write_start, tile_m), :] = h_bf

        # Last layer: fold global_mean_pool into this epilogue.
        @pl.when(l == num_layers - 1)
        def _pool():
            pool_ref[...] += jnp.dot(p_ref[...], h_bf,
                                     preferred_element_type=jnp.float32)

    # Very last step: dropout (identity in eval) + final Linear.
    # TODO(synk): training-mode dropout (stochastic mask via pltpu.prng_*) not implemented.
    @pl.when((l == num_layers - 1) & (i == ni - 1) & (k == nk - 1))
    def _final_linear():
        out_ref[...] = (jnp.dot(pool_ref[...].astype(jnp.bfloat16), wl_ref[...],
                                preferred_element_type=jnp.float32)
                        + bl_ref[...])


# ---------------------------------------------------------------------------
# Wrapper
# ---------------------------------------------------------------------------

def gcn_forward_fused(a_hat, x, w_stack, b_stack, pool_mat, w_lin, b_lin, *,
                      tile_m=256, tile_k=256):
    """Single pallas_call for the whole padded forward pass.

    a_hat   : (n_pad, n_pad)       bf16
    x       : (n_pad, f_pad)       bf16
    w_stack : (L, f_pad, f_pad)    bf16
    b_stack : (L, 1, f_pad)        f32
    pool_mat: (g_pad, n_pad)       bf16
    w_lin   : (f_pad, f_pad)       bf16
    b_lin   : (1, f_pad)           f32
    returns : (g_pad, f_pad)       f32
    """
    n = a_hat.shape[0]
    f = x.shape[1]
    g = pool_mat.shape[0]
    num_layers = w_stack.shape[0]
    assert n % tile_m == 0 and n % tile_k == 0

    flops = (num_layers * (2 * n * n * f + 2 * n * f * f)
             + 2 * g * n * f + 2 * g * f * f)
    bytes_accessed = (num_layers * a_hat.size * a_hat.dtype.itemsize
                      + x.size * x.dtype.itemsize
                      + w_stack.size * w_stack.dtype.itemsize
                      + b_stack.size * b_stack.dtype.itemsize
                      + pool_mat.size * pool_mat.dtype.itemsize
                      + w_lin.size * w_lin.dtype.itemsize
                      + b_lin.size * b_lin.dtype.itemsize
                      + g * f * 4)

    kernel = functools.partial(gcn_fused_kernel, n_pad=n, tile_m=tile_m,
                               tile_k=tile_k, num_layers=num_layers)

    return pl.pallas_call(
        kernel,
        out_shape=jax.ShapeDtypeStruct((g, f), jnp.float32),
        grid_spec=pltpu.PrefetchScalarGridSpec(
            num_scalar_prefetch=0,
            grid=(num_layers, n // tile_m, n // tile_k),
            in_specs=[
                pl.BlockSpec((tile_m, tile_k), lambda l, i, k: (i, k)),  # A_hat tile (streamed)
                pl.BlockSpec((n, f), lambda l, i, k: (0, 0)),            # X (VMEM resident)
                pl.BlockSpec((1, f, f), lambda l, i, k: (l, 0, 0)),      # W_l
                pl.BlockSpec((1, 1, f), lambda l, i, k: (l, 0, 0)),      # b_l
                pl.BlockSpec((g, tile_m), lambda l, i, k: (0, i)),       # pool cols for row tile i
                pl.BlockSpec((f, f), lambda l, i, k: (0, 0)),            # W_lin (resident)
                pl.BlockSpec((1, f), lambda l, i, k: (0, 0)),            # b_lin (resident)
            ],
            out_specs=pl.BlockSpec((g, f), lambda l, i, k: (0, 0)),
            scratch_shapes=[
                pltpu.VMEM((tile_m, f), jnp.float32),     # A@H accumulator
                pltpu.VMEM((2 * n, f), jnp.bfloat16),     # ping-pong node features
                pltpu.VMEM((g, f), jnp.float32),          # pooled accumulator
            ],
        ),
        compiler_params=pltpu.CompilerParams(
            # Layers depend on all row tiles of the previous layer -> fully
            # sequential grid (fusion beats megacore at this problem size).
            dimension_semantics=("arbitrary", "arbitrary", "arbitrary")),
        cost_estimate=pl.CostEstimate(flops=flops, transcendentals=0,
                                      bytes_accessed=bytes_accessed),
    )(a_hat, x, w_stack, b_stack, pool_mat, w_lin, b_lin)


# ---------------------------------------------------------------------------
# Graph glue (built once per batch, outside the hot path; cacheable)
# ---------------------------------------------------------------------------

def build_normalized_adjacency(edge_index, num_nodes):
    """A_hat = D^{-1/2} (A + I) D^{-1/2}  (dense, float32)."""
    src, dst = edge_index
    adj = jnp.zeros((num_nodes, num_nodes), dtype=jnp.float32)
    adj = adj.at[src, dst].set(1.0)
    adj = adj.at[dst, src].set(1.0)                       # undirected
    adj = adj + jnp.eye(num_nodes, dtype=jnp.float32)     # self-loops
    deg = jnp.sum(adj, axis=1)
    d_inv_sqrt = jnp.where(deg > 0, 1.0 / jnp.sqrt(deg), 0.0)
    return adj * d_inv_sqrt[:, None] * d_inv_sqrt[None, :]


def build_mean_pool_matrix(batch, num_graphs):
    """P[g, i] = 1/count_g if batch[i] == g else 0."""
    onehot = (batch[None, :] == jnp.arange(num_graphs)[:, None]).astype(jnp.float32)
    counts = jnp.maximum(jnp.sum(onehot, axis=1, keepdims=True), 1.0)
    return onehot / counts


def pad2(x, rows, cols):
    return jnp.pad(x, ((0, rows - x.shape[0]), (0, cols - x.shape[1])))


def glorot(key, shape):
    fan_in, fan_out = shape
    limit = jnp.sqrt(6.0 / (fan_in + fan_out))
    return jax.random.uniform(key, shape, jnp.float32, -limit, limit)


# ---------------------------------------------------------------------------
# Demo / self-test
# ---------------------------------------------------------------------------

if __name__ == "__main__":
    # MUTAG-like sizes; padded internally to lane-dense / tile-aligned shapes.
    num_nodes = 200
    num_node_features = 7
    hidden_channels = 64
    num_classes = 2
    num_graphs = 2

    TILE = 256       # full 256-deep MXU contractions (v6e/v7x 256^2 MXU)
    n_pad = 512      # 2 row tiles x 2 k tiles -> reduction + row loops exercised
    f_pad = 128      # features / hidden / classes padded to 128 lanes
    g_pad = 16

    key = jax.random.PRNGKey(0)
    (k_x, k_e0, k_e1, k1, k2, k3, k4,
     kb1, kb2, kb3, kbl) = jax.random.split(key, 11)

    # Node features.
    x = jax.random.normal(k_x, (num_nodes, num_node_features), jnp.float32)

    # Deterministic random edges, each graph within its own node range.
    half = num_nodes // 2
    e_per = 4 * half
    src0 = jax.random.randint(k_e0, (e_per,), 0, half)
    dst0 = jax.random.randint(jax.random.fold_in(k_e0, 1), (e_per,), 0, half)
    src1 = jax.random.randint(k_e1, (e_per,), half, num_nodes)
    dst1 = jax.random.randint(jax.random.fold_in(k_e1, 1), (e_per,), half, num_nodes)
    edge_index = jnp.stack([jnp.concatenate([src0, src1]),
                            jnp.concatenate([dst0, dst1])], axis=0)

    # batch vector: first half of nodes -> graph 0, second half -> graph 1.
    batch = jnp.concatenate([jnp.zeros((half,), jnp.int32),
                             jnp.ones((num_nodes - half,), jnp.int32)])

    # Glue: dense normalized adjacency and mean-pool matrix.
    a_hat = build_normalized_adjacency(edge_index, num_nodes)
    pool_mat = build_mean_pool_matrix(batch, num_graphs)

    # Parameters (shapes follow GCN.__init__).
    w1 = glorot(k1, (num_node_features, hidden_channels))
    w2 = glorot(k2, (hidden_channels, hidden_channels))
    w3 = glorot(k3, (hidden_channels, hidden_channels))
    w_lin = glorot(k4, (hidden_channels, num_classes))
    b1 = 0.1 * jax.random.normal(kb1, (1, hidden_channels), jnp.float32)
    b2 = 0.1 * jax.random.normal(kb2, (1, hidden_channels), jnp.float32)
    b3 = 0.1 * jax.random.normal(kb3, (1, hidden_channels), jnp.float32)
    b_lin = 0.01 * jax.random.normal(kbl, (1, num_classes), jnp.float32)

    # Pad to lane-dense shapes; big operands -> bf16, biases stay f32.
    a_p = pad2(a_hat, n_pad, n_pad).astype(jnp.bfloat16)
    x_p = pad2(x, n_pad, f_pad).astype(jnp.bfloat16)
    w_stack = jnp.stack([pad2(w1, f_pad, f_pad),
                         pad2(w2, f_pad, f_pad),
                         pad2(w3, f_pad, f_pad)]).astype(jnp.bfloat16)
    b_stack = jnp.stack([pad2(b1, 1, f_pad),
                         pad2(b2, 1, f_pad),
                         pad2(b3, 1, f_pad)]).astype(jnp.float32)
    pool_p = pad2(pool_mat, g_pad, n_pad).astype(jnp.bfloat16)
    wl_p = pad2(w_lin, f_pad, f_pad).astype(jnp.bfloat16)
    bl_p = pad2(b_lin, 1, f_pad).astype(jnp.float32)

    out_full = gcn_forward_fused(a_p, x_p, w_stack, b_stack, pool_p, wl_p, bl_p,
                                 tile_m=TILE, tile_k=TILE)
    out_full = jax.block_until_ready(out_full)
    out = out_full[:num_graphs, :num_classes]
    assert out.shape == (num_graphs, num_classes)

    # Reference 1: identical bf16/f32 mixed-precision path in plain JAX (tight).
    def ref_layer(a, h, w, b, relu):
        acc = jnp.dot(a, h, preferred_element_type=jnp.float32)
        hh = jnp.dot(acc.astype(jnp.bfloat16), w,
                     preferred_element_type=jnp.float32) + b
        if relu:
            hh = jnp.maximum(hh, 0.0)
        return hh.astype(jnp.bfloat16)

    h_r = ref_layer(a_p, x_p, w_stack[0], b_stack[0], True)
    h_r = ref_layer(a_p, h_r, w_stack[1], b_stack[1], True)
    h_r = ref_layer(a_p, h_r, w_stack[2], b_stack[2], False)
    pooled_r = jnp.dot(pool_p, h_r, preferred_element_type=jnp.float32)
    ref_mixed = (jnp.dot(pooled_r.astype(jnp.bfloat16), wl_p,
                         preferred_element_type=jnp.float32) + bl_p)
    ref_mixed = ref_mixed[:num_graphs, :num_classes]
    assert jnp.allclose(out, ref_mixed, atol=2e-3, rtol=2e-3)

    # Reference 2: pure f32 math on unpadded operands (loose bf16-vs-f32 check).
    h32 = jnp.maximum(a_hat @ (x @ w1) + b1, 0.0)
    h32 = jnp.maximum(a_hat @ (h32 @ w2) + b2, 0.0)
    h32 = a_hat @ (h32 @ w3) + b3
    ref32 = (pool_mat @ h32) @ w_lin + b_lin
    assert jnp.allclose(out, ref32, atol=1.5e-1, rtol=1.5e-1)

    print("KERNEL_OK")
</pallas_src>

<mosaic_0001>
module attributes {stable_mosaic.version = 11 : i64} {
  func.func @gcn_fused_kernel(%arg0: i32, %arg1: i32, %arg2: i32, %arg3: memref<256x256xbf16, #tpu.memory_space<vmem>>, %arg4: memref<512x128xbf16, #tpu.memory_space<vmem>>, %arg5: memref<1x128x128xbf16, #tpu.memory_space<vmem>>, %arg6: memref<1x1x128xf32, #tpu.memory_space<vmem>>, %arg7: memref<16x256xbf16, #tpu.memory_space<vmem>>, %arg8: memref<128x128xbf16, #tpu.memory_space<vmem>>, %arg9: memref<1x128xf32, #tpu.memory_space<vmem>>, %arg10: memref<16x128xf32, #tpu.memory_space<vmem>>, %arg11: memref<256x128xf32, #tpu.memory_space<vmem>>, %arg12: memref<1024x128xbf16, #tpu.memory_space<vmem>>, %arg13: memref<16x128xf32, #tpu.memory_space<vmem>>) attributes {dimension_semantics = [#tpu.dimension_semantics<arbitrary>, #tpu.dimension_semantics<arbitrary>, #tpu.dimension_semantics<arbitrary>], iteration_bounds = array<i64: 3, 2, 2>, scalar_prefetch = 0 : i64, scratch_operands = 3 : i64, tpu.core_type = #tpu.core_type<tc>, window_params = [{transform_indices = @transform_0, window_bounds = array<i64: 256, 256>}, {pipeline_mode = #tpu.pipeline_mode<synchronous>, transform_indices = @transform_1, window_bounds = array<i64: 512, 128>}, {transform_indices = @transform_2, window_bounds = array<i64: 1, 128, 128>}, {transform_indices = @transform_3, window_bounds = array<i64: 1, 1, 128>}, {transform_indices = @transform_4, window_bounds = array<i64: 16, 256>}, {pipeline_mode = #tpu.pipeline_mode<synchronous>, transform_indices = @transform_5, window_bounds = array<i64: 128, 128>}, {pipeline_mode = #tpu.pipeline_mode<synchronous>, transform_indices = @transform_6, window_bounds = array<i64: 1, 128>}, {pipeline_mode = #tpu.pipeline_mode<synchronous>, transform_indices = @transform_7, window_bounds = array<i64: 16, 128>}]} {
    %c0_i32 = arith.constant 0 : i32
    %0 = arith.cmpi eq, %arg0, %c0_i32 : i32
    %c0_i32_0 = arith.constant 0 : i32
    %1 = arith.cmpi eq, %arg1, %c0_i32_0 : i32
    %2 = arith.andi %0, %1 : i1
    %c0_i32_1 = arith.constant 0 : i32
    %3 = arith.cmpi eq, %arg2, %c0_i32_1 : i32
    %4 = arith.andi %2, %3 : i1
    %5 = arith.extui %4 : i1 to i32
    %c0_i32_2 = arith.constant 0 : i32
    %6 = arith.cmpi ne, %5, %c0_i32_2 : i32
    scf.if %6 {
      %c0_28 = arith.constant 0 : index
      %c0_29 = arith.constant 0 : index
      %56 = vector.load %arg4[%c0_28, %c0_29] : memref<512x128xbf16, #tpu.memory_space<vmem>>, vector<512x128xbf16>
      %c0_30 = arith.constant 0 : index
      %c0_31 = arith.constant 0 : index
      %57 = vector.load %arg12[%c0_30, %c0_31] : memref<1024x128xbf16, #tpu.memory_space<vmem>>, vector<512x128xbf16>
      tpu.vector_store %arg12[%c0_30, %c0_31], %56 {strides = array<i32>} : memref<1024x128xbf16, #tpu.memory_space<vmem>>, vector<512x128xbf16>,
      %cst_32 = arith.constant 0.000000e+00 : f32
      %58 = vector.broadcast %cst_32 : f32 to vector<16x128xf32>
      %c0_33 = arith.constant 0 : index
      %c0_34 = arith.constant 0 : index
      %59 = vector.load %arg13[%c0_33, %c0_34] : memref<16x128xf32, #tpu.memory_space<vmem>>, vector<16x128xf32>
      tpu.vector_store %arg13[%c0_33, %c0_34], %58 {strides = array<i32>} : memref<16x128xf32, #tpu.memory_space<vmem>>, vector<16x128xf32>,
    } else {
    }
    %c2_i32 = arith.constant 2 : i32
    %c0_i32_3 = arith.constant 0 : i32
    %7 = arith.cmpi eq, %c2_i32, %c0_i32_3 : i32
    %c1_i32 = arith.constant 1 : i32
    %8 = arith.select %7, %c1_i32, %c2_i32 : i32
    %9 = arith.remsi %arg0, %8 : i32
    %c0_i32_4 = arith.constant 0 : i32
    %10 = arith.cmpi ne, %9, %c0_i32_4 : i32
    %c0_i32_5 = arith.constant 0 : i32
    %11 = arith.cmpi slt, %9, %c0_i32_5 : i32
    %c0_i32_6 = arith.constant 0 : i32
    %12 = arith.cmpi slt, %8, %c0_i32_6 : i32
    %13 = arith.xori %11, %12 : i1
    %14 = arith.andi %13, %10 : i1
    %15 = arith.addi %9, %8 : i32
    %16 = arith.select %14, %15, %9 : i32
    %c512_i32 = arith.constant 512 : i32
    %17 = arith.muli %16, %c512_i32 : i32
    %c256_i32 = arith.constant 256 : i32
    %18 = arith.muli %arg2, %c256_i32 : i32
    %19 = arith.addi %17, %18 : i32
    %20 = tpu.assume_multiple %19, 256 : i32
    %c2_i32_7 = arith.constant 2 : i32
    %c0_i32_8 = arith.constant 0 : i32
    %21 = arith.cmpi eq, %c2_i32_7, %c0_i32_8 : i32
    %c1_i32_9 = arith.constant 1 : i32
    %22 = arith.select %21, %c1_i32_9, %c2_i32_7 : i32
    %23 = arith.remsi %arg0, %22 : i32
    %c0_i32_10 = arith.constant 0 : i32
    %24 = arith.cmpi ne, %23, %c0_i32_10 : i32
    %c0_i32_11 = arith.constant 0 : i32
    %25 = arith.cmpi slt, %23, %c0_i32_11 : i32
    %c0_i32_12 = arith.constant 0 : i32
    %26 = arith.cmpi slt, %22, %c0_i32_12 : i32
    %27 = arith.xori %25, %26 : i1
    %28 = arith.andi %27, %24 : i1
    %29 = arith.addi %23, %22 : i32
    %30 = arith.select %28, %29, %23 : i32
    %c1_i32_13 = arith.constant 1 : i32
    %31 = arith.subi %c1_i32_13, %30 : i32
    %c512_i32_14 = arith.constant 512 : i32
    %32 = arith.muli %31, %c512_i32_14 : i32
    %c256_i32_15 = arith.constant 256 : i32
    %33 = arith.muli %arg1, %c256_i32_15 : i32
    %34 = arith.addi %32, %33 : i32
    %35 = tpu.assume_multiple %34, 256 : i32
    %c0 = arith.constant 0 : index
    %c0_16 = arith.constant 0 : index
    %36 = vector.load %arg3[%c0, %c0_16] : memref<256x256xbf16, #tpu.memory_space<vmem>>, vector<256x256xbf16>
    %37 = arith.index_cast %20 : i32 to index
    %c0_17 = arith.constant 0 : index
    %38 = vector.load %arg12[%37, %c0_17] : memref<1024x128xbf16, #tpu.memory_space<vmem>>, vector<256x128xbf16>
    %cst = arith.constant dense<0.000000e+00> : vector<256x128xf32>
    %39 = tpu.matmul %36, %38, %cst {dimension_numbers = #tpu.dot_dimension_numbers<[1], [0], [0], [1], [0, 0, 1, 1], [], []>} : vector<256x256xbf16>, vector<256x128xbf16>, vector<256x128xf32> -> vector<256x128xf32>
    %c0_i32_18 = arith.constant 0 : i32
    %40 = arith.cmpi eq, %arg2, %c0_i32_18 : i32
    %41 = arith.extui %40 : i1 to i32
    %c0_i32_19 = arith.constant 0 : i32
    %42 = arith.cmpi ne, %41, %c0_i32_19 : i32
    scf.if %42 {
      %c0_28 = arith.constant 0 : index
      %c0_29 = arith.constant 0 : index
      %56 = vector.load %arg11[%c0_28, %c0_29] : memref<256x128xf32, #tpu.memory_space<vmem>>, vector<256x128xf32>
      tpu.vector_store %arg11[%c0_28, %c0_29], %39 {strides = array<i32>} : memref<256x128xf32, #tpu.memory_space<vmem>>, vector<256x128xf32>,
    } else {
    }
    %c0_i32_20 = arith.constant 0 : i32
    %43 = arith.cmpi sgt, %arg2, %c0_i32_20 : i32
    %44 = arith.extui %43 : i1 to i32
    %c0_i32_21 = arith.constant 0 : i32
    %45 = arith.cmpi ne, %44, %c0_i32_21 : i32
    scf.if %45 {
      %c0_28 = arith.constant 0 : index
      %c0_29 = arith.constant 0 : index
      %56 = vector.load %arg11[%c0_28, %c0_29] : memref<256x128xf32, #tpu.memory_space<vmem>>, vector<256x128xf32>
      %57 = arith.addf %56, %39 : vector<256x128xf32>
      %c0_30 = arith.constant 0 : index
      %c0_31 = arith.constant 0 : index
      %58 = vector.load %arg11[%c0_30, %c0_31] : memref<256x128xf32, #tpu.memory_space<vmem>>, vector<256x128xf32>
      tpu.vector_store %arg11[%c0_30, %c0_31], %57 {strides = array<i32>} : memref<256x128xf32, #tpu.memory_space<vmem>>, vector<256x128xf32>,
    } else {
    }
    %c1_i32_22 = arith.constant 1 : i32
    %46 = arith.cmpi eq, %arg2, %c1_i32_22 : i32
    %47 = arith.extui %46 : i1 to i32
    %c0_i32_23 = arith.constant 0 : i32
    %48 = arith.cmpi ne, %47, %c0_i32_23 : i32
    scf.if %48 {
      %c0_28 = arith.constant 0 : index
      %c0_29 = arith.constant 0 : index
      %56 = vector.load %arg11[%c0_28, %c0_29] : memref<256x128xf32, #tpu.memory_space<vmem>>, vector<256x128xf32>
      %57 = arith.truncf %56 : vector<256x128xf32> to vector<256x128xbf16>
      %c0_30 = arith.constant 0 : index
      %c0_31 = arith.constant 0 : index
      %c0_32 = arith.constant 0 : index
      %58 = vector.load %arg5[%c0_30, %c0_31, %c0_32] : memref<1x128x128xbf16, #tpu.memory_space<vmem>>, vector<1x128x128xbf16>
      %59 = vector.shape_cast %58 : vector<1x128x128xbf16> to vector<128x128xbf16>
      %cst_33 = arith.constant dense<0.000000e+00> : vector<256x128xf32>
      %60 = tpu.matmul %57, %59, %cst_33 {dimension_numbers = #tpu.dot_dimension_numbers<[1], [0], [0], [1], [0, 0, 1, 1], [], []>} : vector<256x128xbf16>, vector<128x128xbf16>, vector<256x128xf32> -> vector<256x128xf32>
      %c0_34 = arith.constant 0 : index
      %c0_35 = arith.constant 0 : index
      %c0_36 = arith.constant 0 : index
      %61 = vector.load %arg6[%c0_34, %c0_35, %c0_36] : memref<1x1x128xf32, #tpu.memory_space<vmem>>, vector<1x1x128xf32>
      %62 = vector.shape_cast %61 : vector<1x1x128xf32> to vector<1x128xf32>
      %63 = vector.broadcast %62 : vector<1x128xf32> to vector<256x128xf32>
      %64 = arith.addf %60, %63 : vector<256x128xf32>
      %c2_i32_37 = arith.constant 2 : i32
      %65 = arith.cmpi slt, %arg0, %c2_i32_37 : i32
      %cst_38 = arith.constant 0.000000e+00 : f32
      %66 = vector.broadcast %cst_38 : f32 to vector<256x128xf32>
      %67 = arith.maximumf %64, %66 : vector<256x128xf32>
      %68 = arith.select %65, %67, %64 : vector<256x128xf32>
      %69 = arith.truncf %68 : vector<256x128xf32> to vector<256x128xbf16>
      %70 = arith.index_cast %35 : i32 to index
      %c0_39 = arith.constant 0 : index
      %71 = vector.load %arg12[%70, %c0_39] : memref<1024x128xbf16, #tpu.memory_space<vmem>>, vector<256x128xbf16>
      tpu.vector_store %arg12[%70, %c0_39], %69 {strides = array<i32>} : memref<1024x128xbf16, #tpu.memory_space<vmem>>, vector<256x128xbf16>,
      %c2_i32_40 = arith.constant 2 : i32
      %72 = arith.cmpi eq, %arg0, %c2_i32_40 : i32
      %73 = arith.extui %72 : i1 to i32
      %c0_i32_41 = arith.constant 0 : i32
      %74 = arith.cmpi ne, %73, %c0_i32_41 : i32
      scf.if %74 {
        %c0_42 = arith.constant 0 : index
        %c0_43 = arith.constant 0 : index
        %75 = vector.load %arg13[%c0_42, %c0_43] : memref<16x128xf32, #tpu.memory_space<vmem>>, vector<16x128xf32>
        %c0_44 = arith.constant 0 : index
        %c0_45 = arith.constant 0 : index
        %76 = vector.load %arg7[%c0_44, %c0_45] : memref<16x256xbf16, #tpu.memory_space<vmem>>, vector<16x256xbf16>
        %cst_46 = arith.constant dense<0.000000e+00> : vector<16x128xf32>
        %77 = tpu.matmul %76, %69, %cst_46 {dimension_numbers = #tpu.dot_dimension_numbers<[1], [0], [0], [1], [0, 0, 1, 1], [], []>} : vector<16x256xbf16>, vector<256x128xbf16>, vector<16x128xf32> -> vector<16x128xf32>
        %78 = arith.addf %75, %77 : vector<16x128xf32>
        %c0_47 = arith.constant 0 : index
        %c0_48 = arith.constant 0 : index
        %79 = vector.load %arg13[%c0_47, %c0_48] : memref<16x128xf32, #tpu.memory_space<vmem>>, vector<16x128xf32>
        tpu.vector_store %arg13[%c0_47, %c0_48], %78 {strides = array<i32>} : memref<16x128xf32, #tpu.memory_space<vmem>>, vector<16x128xf32>,
      } else {
      }
    } else {
    }
    %c2_i32_24 = arith.constant 2 : i32
    %49 = arith.cmpi eq, %arg0, %c2_i32_24 : i32
    %c1_i32_25 = arith.constant 1 : i32
    %50 = arith.cmpi eq, %arg1, %c1_i32_25 : i32
    %51 = arith.andi %49, %50 : i1
    %c1_i32_26 = arith.constant 1 : i32
    %52 = arith.cmpi eq, %arg2, %c1_i32_26 : i32
    %53 = arith.andi %51, %52 : i1
    %54 = arith.extui %53 : i1 to i32
    %c0_i32_27 = arith.constant 0 : i32
    %55 = arith.cmpi ne, %54, %c0_i32_27 : i32
    scf.if %55 {
      %c0_28 = arith.constant 0 : index
      %c0_29 = arith.constant 0 : index
      %56 = vector.load %arg13[%c0_28, %c0_29] : memref<16x128xf32, #tpu.memory_space<vmem>>, vector<16x128xf32>
      %57 = arith.truncf %56 : vector<16x128xf32> to vector<16x128xbf16>
      %c0_30 = arith.constant 0 : index
      %c0_31 = arith.constant 0 : index
      %58 = vector.load %arg8[%c0_30, %c0_31] : memref<128x128xbf16, #tpu.memory_space<vmem>>, vector<128x128xbf16>
      %cst_32 = arith.constant dense<0.000000e+00> : vector<16x128xf32>
      %59 = tpu.matmul %57, %58, %cst_32 {dimension_numbers = #tpu.dot_dimension_numbers<[1], [0], [0], [1], [0, 0, 1, 1], [], []>} : vector<16x128xbf16>, vector<128x128xbf16>, vector<16x128xf32> -> vector<16x128xf32>
      %c0_33 = arith.constant 0 : index
      %c0_34 = arith.constant 0 : index
      %60 = vector.load %arg9[%c0_33, %c0_34] : memref<1x128xf32, #tpu.memory_space<vmem>>, vector<1x128xf32>
      %61 = vector.broadcast %60 : vector<1x128xf32> to vector<16x128xf32>
      %62 = arith.addf %59, %61 : vector<16x128xf32>
      %c0_35 = arith.constant 0 : index
      %c0_36 = arith.constant 0 : index
      %63 = vector.load %arg10[%c0_35, %c0_36] : memref<16x128xf32, #tpu.memory_space<vmem>>, vector<16x128xf32>
      tpu.vector_store %arg10[%c0_35, %c0_36], %62 {strides = array<i32>} : memref<16x128xf32, #tpu.memory_space<vmem>>, vector<16x128xf32>,
    } else {
    }
    return
  }
  func.func @transform_0(%arg0: i32, %arg1: i32, %arg2: i32) -> (i32, i32) {
    %c0_i32 = arith.constant 0 : i32
    return %arg1, %arg2 : i32, i32
  }
  func.func @transform_1(%arg0: i32, %arg1: i32, %arg2: i32) -> (i32, i32) {
    %c0_i32 = arith.constant 0 : i32
    %c0_i32_0 = arith.constant 0 : i32
    %c0_i32_1 = arith.constant 0 : i32
    return %c0_i32, %c0_i32_0 : i32, i32
  }
  func.func @transform_2(%arg0: i32, %arg1: i32, %arg2: i32) -> (i32, i32, i32) {
    %c0_i32 = arith.constant 0 : i32
    %c0_i32_0 = arith.constant 0 : i32
    %c0_i32_1 = arith.constant 0 : i32
    return %arg0, %c0_i32, %c0_i32_0 : i32, i32, i32
  }
  func.func @transform_3(%arg0: i32, %arg1: i32, %arg2: i32) -> (i32, i32, i32) {
    %c0_i32 = arith.constant 0 : i32
    %c0_i32_0 = arith.constant 0 : i32
    %c0_i32_1 = arith.constant 0 : i32
    return %arg0, %c0_i32, %c0_i32_0 : i32, i32, i32
  }
  func.func @transform_4(%arg0: i32, %arg1: i32, %arg2: i32) -> (i32, i32) {
    %c0_i32 = arith.constant 0 : i32
    %c0_i32_0 = arith.constant 0 : i32
    return %c0_i32, %arg1 : i32, i32
  }
  func.func @transform_5(%arg0: i32, %arg1: i32, %arg2: i32) -> (i32, i32) {
    %c0_i32 = arith.constant 0 : i32
    %c0_i32_0 = arith.constant 0 : i32
    %c0_i32_1 = arith.constant 0 : i32
    return %c0_i32, %c0_i32_0 : i32, i32
  }
  func.func @transform_6(%arg0: i32, %arg1: i32, %arg2: i32) -> (i32, i32) {
    %c0_i32 = arith.constant 0 : i32
    %c0_i32_0 = arith.constant 0 : i32
    %c0_i32_1 = arith.constant 0 : i32
    return %c0_i32, %c0_i32_0 : i32, i32
  }
  func.func @transform_7(%arg0: i32, %arg1: i32, %arg2: i32) -> (i32, i32) {
    %c0_i32 = arith.constant 0 : i32
    %c0_i32_0 = arith.constant 0 : i32
    %c0_i32_1 = arith.constant 0 : i32
    return %c0_i32, %c0_i32_0 : i32, i32
  }
}

</mosaic_0001>

<bundles_post_ra>
// kernel: tpu_custom_call.1
= control target key start
LH: loop header
LB: loop body
LE: loop exit
PB: predicated region body
PF: predicated region fallthrough
CT: control target
= control target key end

     0   :  { %s3919_s0 = inlined_call_operand.hbm [shape: bf16[512,512], index: 0, kind: input, shape index: {}]   ;;  %s3920_s1 = inlined_call_operand.hbm [shape: bf16[512,128], index: 1, kind: input, shape index: {}]   ;;  %s3921_s2 = inlined_call_operand.hbm [shape: bf16[3,128,128], index: 2, kind: input, shape index: {}]   ;;  %s3922_s3 = inlined_call_operand.vmem [shape: f32[3,1,128], index: 3, kind: input, shape index: {}]   ;;  %s3923_s4 = inlined_call_operand.hbm [shape: bf16[16,512], index: 4, kind: input, shape index: {}]   ;;  %s3924_s5 = inlined_call_operand.hbm [shape: bf16[128,128], index: 5, kind: input, shape index: {}]   ;;  %s3925_s6 = inlined_call_operand.vmem [shape: f32[1,128], index: 6, kind: input, shape index: {}]   ;;  %s3926_s7 = inlined_call_operand.hbm [shape: f32[16,128], index: 7, kind: output, shape index: {}]  }
   0x1   :  { %3962 = sst [smem:[#allocation29_spill]] %s3919_s0 }
   0x2   :  { %3963 = sst [smem:[#allocation30_spill]] %s3920_s1 }
   0x3   :  { %3964 = sst [smem:[#allocation31_spill]] %s3921_s2 }
   0x4   :  { %3965 = sst [smem:[#allocation32_spill]] %s3922_s3 }
   0x5   :  { %3966 = sst [smem:[#allocation33_spill]] %s3923_s4 }
   0x6   :  { %3967 = sst [smem:[#allocation34_spill]] %s3924_s5 }
   0x7   :  { %3968 = sst [smem:[#allocation35_spill]] %s3925_s6 }
   0x8   :  { %3969 = sst [smem:[#allocation36_spill]] %s3926_s7 }
   0x9   :  { %12 = vsyncpa [#allocation6], 0 }
   0xa   :  { %14 = vsyncpa [#allocation6 + $0x1], 0 }
   0xb   :  { %15 = vsyncpa [#allocation9], 0 }
   0xc   :  { %16 = vsyncpa [#allocation7], 0  ;;  %s3039_s24 = smov 0   ;;  %s3041_s25 = smov 0  }
   0xd   :  { %s3043_s26 = smov 0   ;;  %s3045_s27 = smov 0  }
   0xe   :  { %s3047_s28 = smov 0   ;;  %s3049_s29 = smov 0  }
   0xf   :  { %s3051_s30 = smov 0   ;;  %s3053_s8 = smov 0  }
  0x10   :  { %s3055_s9 = smov 0   ;;  %s3057_s10 = smov 0  }
  0x11   :  { %s3059_s11 = smov 0   ;;  %s3061_s12 = smov 0  }
  0x12   :  { %s3063_s13 = smov 0   ;;  %s3065_s14 = smov 0  }
  0x13   :  { %s3067_s15 = smov 0   ;;  %s3069_s16 = smov 0  }
  0x14 LB: > { %3970 = sst [smem:[#allocation20_spill]] %s2929_s26  ;;  %s34_s17 = sadd.s32 1, %s2969_s13  ;;  %s2981_s16 = sphi %s3069_s16, %s22_s16   ;;  %s2977_s15 = sphi %s3067_s15, %s4045_s15   ;;  %s2973_s14 = sphi %s3065_s14, %s4057_s14   ;;  %s2969_s13 = sphi %s3063_s13, %s4056_s13   ;;  %s2965_s12 = sphi %s3061_s12, %s4042_s12   ;;  %s2961_s11 = sphi %s3059_s11, %s4055_s11   ;;  %s2957_s10 = sphi %s3057_s10, %s4041_s10   ;;  %s2953_s9 = sphi %s3055_s9, %s4054_s9   ;;  %s2949_s8 = sphi %s3053_s8, %s4053_s8   ;;  %s2945_s30 = sphi %s3051_s30, %s4052_s30   ;;  %s2941_s29 = sphi %s3049_s29, %s4051_s29   ;;  %s2937_s28 = sphi %s3047_s28, %s4050_s28   ;;  %s2933_s27 = sphi %s3045_s27, %s4049_s27   ;;  %s2929_s26 = sphi %s3043_s26, %s4048_s26   ;;  %s2925_s25 = sphi %s3041_s25, %s4047_s25   ;;  %s2921_s24 = sphi %s3039_s24, %s4046_s24  }
  0x15   : > { %3971 = sst [smem:[#allocation21_spill]] %s2957_s10  ;;  %p35_p0 = scmp.ge.s32.totalorder %s34_s17, 2 }
  0x16   : > { %3972 = sst [smem:[#allocation22_spill]] %s2961_s11  ;;  %s37_s18 = sadd.s32 1, %s2973_s14 }
  0x17   : > { %3973 = sst [smem:[#allocation23_spill]] %s2965_s12  ;;  %p57_p1 = scmp.ne.s32.totalorder %s2953_s9, %s2949_s8 }
  0x18   : > { %3974 = sst [smem:[#allocation24_spill]] %s2969_s13  ;;  %p3940_p2 = scmp.eq.s32.totalorder %s2981_s16, 0 }
  0x19   : > { %3975 = sst [smem:[#allocation25_spill]] %s2977_s15  ;;  %s4059_s17 = smov (%p35_p0, %s34_s17), 0 }
  0x1a   : > { %3976 = sst [smem:[#allocation26_spill]] %s4059_s17  ;;  %s4061_s18 = smov (!%p35_p0, %s37_s18), %s2973_s14 }
  0x1b   : > { %s46_s19 = ssub.s32 %s2969_s13, %s4059_s17  ;;  %s50_s20 = sadd.s32 1, %s2953_s9 }
  0x1c   : > { %p3941_p3 = scmp.ge.s32.totalorder %s4061_s18, 2  ;;  %p3135_p4 = por %p3940_p2, %p57_p1 }
  0x1d   : > { %p63_p5 = scmp.ne.s32.totalorder %s2949_s8, %s2945_s30  ;;  %s278_s23 = sand.u32 1, %s2981_s16  }
  0x1e   : > { %s3144_s22 = scalar_select %p3941_p3, 0, %s4061_s18  }
  0x1f   : > { %s280_s7 = sand.u32 1, %s2953_s9   ;;  %p3939_p6 = scmp.lt.s32.totalorder %s2981_s16, 12 }
  0x20   : > { %3978 = sst [smem:[#allocation27_spill]] %s3144_s22  ;;  %s3150_s6 = ssub.s32 %s2973_s14, %s3144_s22 }
  0x21   : > { %s47_s17 = sor.u32 %s46_s19, %s3150_s6  ;;  %s1989_s3 = sshll.u32 %s280_s7, 8 }
  0x22   : > { %p48_p7 = scmp.eq.s32.totalorder %s47_s17, 0  ;;  %s1991_s10 = sshll.u32 %s2969_s13, 1 }
  0x23   : > { %s3949_s12 = sshll.u32 %s2973_s14, 7  ;;  %s282_s4 = scalar_lea.vmem [#allocation5], %s1989_s3 }
  0x24   : > { %s3156_s11 = scalar_select %p48_p7, %s2953_s9, %s50_s20  }
  0x25   : > { %s292_s26 = sshll.u32 %s282_s4, 4  ;;  %s289_s5 = sadd.s32 %s3949_s12, %s1991_s10  ;;  %s3161_s26 = int_to_ptr.vmem [resolvable:$true] %s292_s26 }
  0x26   : > { %s1993_s2 = sshll.u32 %s289_s5, 6  ;;  %p3167_p8 = pnand %p3939_p6, %p3135_p4 }
  0x27   : > { %s3980_s0 = sld [smem:[#allocation29_spill]]  ;;  %s3177_s3 = scalar_lea.sflag [#allocation6], %s278_s23 }
  0x28   : > { %p2661_p11 = pneg %p3167_p8 }
  0x2d   : > { %s3174_s7 = scalar_lea.hbm %s3980_s0, %s1993_s2  ;;  %s2664_s2 = scalar_lea.hbm %s3980_s0, 16384 }
  0x2e   : > { %s2659_s4 = scalar_lea.hbm %s3174_s7, 4096  ;;  %p2665_p0 = scmp.lt.u32.totalorder %s3174_s7, %s3980_s0 }
  0x2f   : > { %p2660_p10 = scmp.ne.s32.totalorder %s3174_s7, %s2659_s4  ;;  %p2666_p1 = scmp.lt.u32.totalorder %s2664_s2, %s2659_s4 }
  0x30   : > { %p2668_p7 = scmp.lt.u32.totalorder %s2659_s4, %s3174_s7 }
  0x31   : > { %p2662_p12 = pnand %p2661_p11, %p2660_p10  ;;  %p2667_p4 = por %p2666_p1, %p2665_p0 }
  0x33   : > { %p2663_p13 = pneg %p2662_p12  ;;  %p2669_p9 = por %p2668_p7, %p2667_p4 }
  0x35   : > { %p2670_p6 = pnand %p2669_p9, %p2663_p13 }
  0x37   : > { %2673 = shalt.err (!%p2670_p6)
}
  0x38   : > { %s2674_s23 = scalar_lea.vmem %s3161_s26, 4096  ;;  %s2983_s19 = smov [#allocation5]  }
  0x39   : > { %p2675_p10 = scmp.ne.s32.totalorder %s3161_s26, %s2674_s23  ;;  %s2679_s17 = sshll.u32 %s2983_s19, 4  ;;  %s2680_s17 = int_to_ptr.vmem [resolvable:$false] %s2679_s17 }
  0x3a   : > { %s2681_s5 = scalar_lea.vmem %s2680_s17, 8192  ;;  %p2682_p3 = scmp.lt.s32.totalorder %s3161_s26, %s2680_s17 }
  0x3b   : > { %p2677_p12 = pnand %p2675_p10, %p2661_p11  ;;  %p2683_p0 = scmp.lt.s32.totalorder %s2681_s5, %s2674_s23 }
  0x3d   : > { %p2678_p2 = pneg %p2677_p12  ;;  %p2684_p1 = por %p2683_p0, %p2682_p3 }
  0x3f   : > { %p2685_p4 = pnand %p2684_p1, %p2678_p2 }
  0x41   : > { %2688 = shalt.err (!%p2685_p4)
}
  0x42   : > { %s3942_s4 = smov 256   ;;  %s3943_s10 = smov 128  }
  0x43   : > { %s3948_s2 = smov 8   ;;  %s3209_s20 = sadd.s32 4294967295, %s2981_s16  }
  0x44   : > { %2405 = dma.hbm_to_vmem [thread:$0]  (!%p3167_p8), %s3174_s7, 4096, %s3161_s26, %s3177_s3, %s3942_s4, %s3943_s10, %s3948_s2  }
  0x45   : > { %p162_p2 = scmp.ne.s32.totalorder %s2925_s25, %s2921_s24  ;;  %p3944_p3 = scmp.eq.s32.totalorder %s3209_s20, 0 }
  0x46   : > { %p1985_p6 = scmp.ge.s32.totalorder %s2981_s16, 1  ;;  %p236_p9 = scmp.lt.s32.totalorder %s2981_s16, 13 }
  0x47   : > { %p3221_p11 = por %p3944_p3, %p63_p5  ;;  %p3227_p13 = por %p162_p2, %p3944_p3 }
  0x48   : > { %p3231_p8 = pnand %p1985_p6, %p236_p9  ;;  %s2987_s24 = smov [#allocation8]  }
  0x49   : > { %s3981_s21 = scalar_select %p3221_p11, 1, 0 }
  0x4a   : > { %s3982_s22 = scalar_select %p3227_p13, 1, 0 }
  0x4b   : > { %s3983_s26 = scalar_select %p3231_p8, 1, 0 }
  0x4c   : > { %s248_s7 = sshll.u32 %s2987_s24, 4  ;;  %p2395_p7 = pneg %p3231_p8  ;;  %s249_s7 = int_to_ptr.vmem [resolvable:$true] %s248_s7 }
  0x4d   : > { %s3985_s1 = sld [smem:[#allocation30_spill]] }
  0x4e   : > { %p3239_p5 = pnand %p2395_p7, %p3944_p3 }
  0x50   : > { %p3955_p12 = pneg %p3239_p5 }
  0x53   : > { %s2689_s17 = scalar_lea.hbm %s3985_s1, 4096 }
  0x54   : > { %p2690_p10 = scmp.ne.s32.totalorder %s3985_s1, %s2689_s17  ;;  %p2696_p4 = scmp.lt.u32.totalorder %s2689_s17, %s3985_s1 }
  0x56   : > { %p2692_p0 = pnand %p3955_p12, %p2690_p10 }
  0x58   : > { %p2693_p1 = pneg %p2692_p0 }
  0x5a   : > { %p2698_p2 = pnand %p2696_p4, %p2693_p1 }
  0x5c   : > { %2701 = shalt.err (!%p2698_p2)
}
  0x5d   : > { %s2702_s23 = scalar_lea.vmem %s249_s7, 4096  ;;  %p2710_p3 = scmp.lt.s32.totalorder %s249_s7, %s249_s7 }
  0x5e   : > { %p2703_p6 = scmp.ne.s32.totalorder %s249_s7, %s2702_s23  ;;  %p2711_p13 = scmp.lt.s32.totalorder %s2702_s23, %s2702_s23 }
  0x60   : > { %p2705_p9 = pnand %p2703_p6, %p3955_p12  ;;  %p2712_p11 = por %p2711_p13, %p2710_p3 }
  0x62   : > { %p2706_p7 = pneg %p2705_p9 }
  0x64   : > { %p2713_p8 = pnand %p2712_p11, %p2706_p7 }
  0x66   : > { %2716 = shalt.err (!%p2713_p8)
}
  0x67   : > { %s3950_s4 = smov 64   ;;  %s3952_s10 = smov 4  }
  0x68   : > { %2398 = dma.hbm_to_vmem [thread:$0]  (!%p3239_p5), %s3985_s1, 4096, %s249_s7, [#allocation9], %s3950_s4, %s3950_s4, %s3952_s10  }
  0x69   : > { %s41_s5 = sadd.s32 1, %s2977_s15  ;;  %p3986_p3 = scmp.ge.s32.totalorder %s4061_s18, 2 }
  0x6a   : > { %s97_s24 = sadd.s32 1, %s2941_s29  ;;  %p104_p11 = scmp.ne.s32.totalorder %s2941_s29, %s2937_s28 }
  0x6b   : > { %s4063_s5 = smov (!%p3986_p3, %s41_s5), %s2977_s15  ;;  %p110_p8 = scmp.ne.s32.totalorder %s2937_s28, %s2933_s27 }
  0x6c   : > { %p43_p13 = scmp.ge.s32.totalorder %s4063_s5, 3  ;;  %p3987_p10 = scmp.eq.s32.totalorder %s2981_s16, 0 }
  0x6d   : > { %s304_s2 = sand.u32 1, %s2941_s29   ;;  %p3990_p1 = scmp.eq.s32.totalorder %s3209_s20, 0 }
  0x6e   : > { %p3279_p0 = por %p104_p11, %p3987_p10  ;;  %s4065_s5 = smov (%p43_p13, %s4063_s5), 0 }
  0x6f   : > { %3989 = sst [smem:[#allocation28_spill]] %s4065_s5  ;;  %p3288_p4 = por %p110_p8, %p3990_p1 }
  0x70   : > { %s1994_s7 = sshll.u32 %s304_s2, 6  ;;  %s94_s19 = ssub.s32 %s2977_s15, %s4065_s5 }
  0x71   : > { %s3991_s18 = scalar_select %p3288_p4, 1, 0 }
  0x72   : > { %p95_p2 = scmp.eq.s32.totalorder %s94_s19, 0  ;;  %s2108_s17 = sshll.u32 %s2977_s15, 10 }
  0x73   : > { %s3992_s4 = sld [smem:[#allocation31_spill]]  ;;  %s306_s0 = scalar_lea.vmem [#allocation10], %s1994_s7 }
  0x74   : > { %s313_s1 = sshll.u32 %s306_s0, 4  ;;  %p3993_p6 = scmp.lt.s32.totalorder %s2981_s16, 12  ;;  %s3303_s1 = int_to_ptr.vmem [resolvable:$true] %s313_s1 }
  0x75   : > { %s3301_s13 = scalar_select %p95_p2, %s2941_s29, %s97_s24  }
  0x76   : > { %p3309_p9 = pnand %p3993_p6, %p3279_p0  ;;  %s2990_s12 = smov [#allocation12]  }
  0x77   : > { %s3313_s19 = sshll.u32 %s2990_s12, 4  ;;  %s262_s19 = int_to_ptr.vmem [resolvable:$true] %s3313_s19 }
  0x78   : > { %p2719_p3 = pneg %p3309_p9 }
  0x79   : > { %s3298_s10 = scalar_lea.hbm %s3992_s4, %s2108_s17  ;;  %s2722_s23 = scalar_lea.hbm %s3992_s4, 3072 }
  0x7a   : > { %s2717_s17 = scalar_lea.hbm %s3298_s10, 1024  ;;  %p2723_p8 = scmp.lt.u32.totalorder %s3298_s10, %s3992_s4 }
  0x7b   : > { %p2718_p7 = scmp.ne.s32.totalorder %s3298_s10, %s2717_s17  ;;  %p2724_p10 = scmp.lt.u32.totalorder %s2722_s23, %s2717_s17 }
  0x7c   : > { %p2726_p1 = scmp.lt.u32.totalorder %s2717_s17, %s3298_s10 }
  0x7d   : > { %p2720_p11 = pnand %p2719_p3, %p2718_p7  ;;  %p2725_p0 = por %p2724_p10, %p2723_p8 }
  0x7f   : > { %p2721_p13 = pneg %p2720_p11  ;;  %p2727_p2 = por %p2726_p1, %p2725_p0 }
  0x81   : > { %p2728_p6 = pnand %p2727_p2, %p2721_p13 }
  0x83   : > { %2731 = shalt.err (!%p2728_p6)
}
  0x84   : > { %s2732_s12 = scalar_lea.vmem %s3303_s1, 1024  ;;  %s2991_s0 = smov [#allocation10]  }
  0x85   : > { %p2733_p7 = scmp.ne.s32.totalorder %s3303_s1, %s2732_s12  ;;  %s2737_s24 = sshll.u32 %s2991_s0, 4  ;;  %s2738_s24 = int_to_ptr.vmem [resolvable:$false] %s2737_s24 }
  0x86   : > { %s2739_s7 = scalar_lea.vmem %s2738_s24, 2048  ;;  %p2740_p4 = scmp.lt.s32.totalorder %s3303_s1, %s2738_s24 }
  0x87   : > { %p2735_p11 = pnand %p2733_p7, %p2719_p3  ;;  %p2741_p8 = scmp.lt.s32.totalorder %s2739_s7, %s2732_s12 }
  0x89   : > { %p2736_p12 = pneg %p2735_p11  ;;  %p2742_p10 = por %p2741_p8, %p2740_p4 }
  0x8b   : > { %p2743_p0 = pnand %p2742_p10, %p2736_p12 }
  0x8d   : > { %2746 = shalt.err (!%p2743_p0)
}
  0x8e   : > { %s3995_s17 = smov 4   ;;  %s3996_s23 = smov 64  }
  0x8f   : > { %2408 = dma.hbm_to_vmem [thread:$0]  (!%p3309_p9), %s3298_s10, 1024, %s3303_s1, %s3177_s3, %s3996_s23, %s3996_s23, %s3995_s17  }
  0x90   : > { %s3997_s4 = sld [smem:[#allocation34_spill]]  ;;  %p3998_p4 = pneg %p3239_p5 }
  0x96   : > { %s2747_s24 = scalar_lea.hbm %s3997_s4, 1024 }
  0x97   : > { %p2748_p12 = scmp.ne.s32.totalorder %s3997_s4, %s2747_s24  ;;  %p2754_p1 = scmp.lt.u32.totalorder %s2747_s24, %s3997_s4 }
  0x99   : > { %p2750_p3 = pnand %p2748_p12, %p3998_p4 }
  0x9b   : > { %p2751_p13 = pneg %p2750_p3 }
  0x9d   : > { %p2756_p2 = pnand %p2754_p1, %p2751_p13 }
  0x9f   : > { %2759 = shalt.err (!%p2756_p2)
}
  0xa0   : > { %s2760_s1 = scalar_lea.vmem %s262_s19, 1024  ;;  %p3999_p6 = pmov %p3998_p4 }
  0xa1   : > { %p2761_p9 = scmp.ne.s32.totalorder %s262_s19, %s2760_s1  ;;  %p2768_p8 = scmp.lt.s32.totalorder %s262_s19, %s262_s19 }
  0xa2   : > { %p2769_p10 = scmp.lt.s32.totalorder %s2760_s1, %s2760_s1 }
  0xa3   : > { %p2763_p7 = pnand %p2761_p9, %p3999_p6 }
  0xa4   : > { %p2770_p0 = por %p2769_p10, %p2768_p8 }
  0xa5   : > { %p2764_p11 = pneg %p2763_p7 }
  0xa7   : > { %p2771_p4 = pnand %p2770_p0, %p2764_p11 }
  0xa9   : > { %2774 = shalt.err (!%p2771_p4)
}
  0xaa   : > { %s4000_s27 = sld [smem:[#allocation20_spill]]  ;;  %p4001_p3 = scmp.eq.s32.totalorder %s3150_s6, 0 }
  0xab   : > { %2401 = dma.hbm_to_vmem [thread:$0]  (!%p3239_p5), %s3997_s4, 1024, %s262_s19, [#allocation9], %s3996_s23, %s3996_s23, %s3995_s17  }
  0xac   : > { %p4002_p13 = scmp.eq.s32.totalorder %s2981_s16, 0  ;;  %s4003_s12 = sshll.u32 %s2973_s14, 7 }
  0xad   : > { %s4004_s1 = sld [smem:[#allocation33_spill]]  ;;  %p4005_p5 = scmp.lt.s32.totalorder %s2981_s16, 12 }
  0xb0   : > { %s149_s0 = sadd.s32 1, %s4000_s27  ;;  %p156_p12 = scmp.ne.s32.totalorder %s4000_s27, %s2925_s25 }
  0xb1   : > { %s3374_s30 = scalar_select %p4001_p3, %s4000_s27, %s149_s0  }
  0xb2   : > { %p158_p1 = por %p156_p12, %p4002_p13  ;;  %s331_s24 = sand.u32 1, %s4000_s27  }
  0xb3   : > { %s3384_s10 = scalar_lea.hbm %s4004_s1, %s4003_s12  ;;  %s1997_s5 = sshll.u32 %s331_s24, 4 }
  0xb4   : > { %p3388_p2 = pnand %p4005_p5, %p158_p1  ;;  %s333_s6 = scalar_lea.vmem [#allocation11], %s1997_s5 }
  0xb5   : > { %s340_s17 = sshll.u32 %s333_s6, 4  ;;  %s2775_s23 = scalar_lea.hbm %s3384_s10, 256  ;;  %s3392_s17 = int_to_ptr.vmem [resolvable:$true] %s340_s17 }
  0xb6   : > { %p2776_p9 = scmp.ne.s32.totalorder %s3384_s10, %s2775_s23  ;;  %p2777_p6 = pneg %p3388_p2 }
  0xb7   : > { %s2780_s24 = scalar_lea.hbm %s4004_s1, 512  ;;  %p2781_p8 = scmp.lt.u32.totalorder %s3384_s10, %s4004_s1 }
  0xb8   : > { %p2778_p7 = pnand %p2777_p6, %p2776_p9  ;;  %p2782_p10 = scmp.lt.u32.totalorder %s2780_s24, %s2775_s23 }
  0xb9   : > { %p2784_p4 = scmp.lt.u32.totalorder %s2775_s23, %s3384_s10 }
  0xba   : > { %p2779_p11 = pneg %p2778_p7  ;;  %p2783_p0 = por %p2782_p10, %p2781_p8 }
  0xbc   : > { %p2785_p12 = por %p2784_p4, %p2783_p0 }
  0xbe   : > { %p2786_p3 = pnand %p2785_p12, %p2779_p11 }
  0xc0   : > { %2789 = shalt.err (!%p2786_p3)
}
  0xc1   : > { %s2790_s2 = scalar_lea.vmem %s3392_s17, 256  ;;  %s2992_s5 = smov [#allocation11]  }
  0xc2   : > { %p2791_p13 = scmp.ne.s32.totalorder %s3392_s17, %s2790_s2  ;;  %s2795_s6 = sshll.u32 %s2992_s5, 4  ;;  %s2796_s6 = int_to_ptr.vmem [resolvable:$false] %s2795_s6 }
  0xc3   : > { %s2797_s27 = scalar_lea.vmem %s2796_s6, 512  ;;  %p2798_p9 = scmp.lt.s32.totalorder %s3392_s17, %s2796_s6 }
  0xc4   : > { %p2793_p1 = pnand %p2791_p13, %p2777_p6  ;;  %p2799_p7 = scmp.lt.s32.totalorder %s2797_s27, %s2790_s2 }
  0xc6   : > { %p2794_p5 = pneg %p2793_p1  ;;  %p2800_p8 = por %p2799_p7, %p2798_p9 }
  0xc8   : > { %p2801_p10 = pnand %p2800_p8, %p2794_p5 }
  0xca   : > { %2804 = shalt.err (!%p2801_p10)
}
  0xcb   : > { %s4007_s23 = smov 8   ;;  %s4008_s0 = smov 128  }
  0xcc   : > { %s4009_s24 = smov 256   ;;  %p4010_p6 = scmp.ne.s32.totalorder %s3983_s26, 0 }
  0xcd   : > { %2411 = dma.hbm_to_vmem [thread:$0]  (!%p3388_p2), %s3384_s10, 256, %s3392_s17, %s3177_s3, %s4009_s24, %s4008_s0, %s4007_s23  }
  0xce   : > { %352 = sbr.rel (%p4010_p6) target bundleno = 1420 (0x58c), region = 48  ;;  %s354_s12 = sand.u32 (!%p4010_p6), 1, %s3209_s20  }
  0xcf   : > { %s356_s7 = sand.u32 (!%p4010_p6), 1, %s2949_s8   ;;  %s355_s5 = scalar_lea.sflag (!%p4010_p6), [#allocation6], %s354_s12 }
  0xd0   : > { %s2001_s2 = sshll.u32 (!%p4010_p6), %s356_s7, 8  ;;  %p4011_p11 = scmp.ne.s32.totalorder (!%p4010_p6), %s3981_s21, 0 }
  0xd1   : > { %s3427_s6 = scalar_lea.vmem (!%p4010_p6), [#allocation5], %s2001_s2 }
  0xd5   : > { %2896 = dma.done.wait (%p4011_p11), %s355_s5, 4096  }
  0xd6   : > { %2898 = vsyncadd (%p4011_p11), %s355_s5, 4294963200  ;;  %p4012_p0 = scmp.eq.s32.totalorder %s3209_s20, 0 }
  0xd8   : > { %2900 = dma.done.wait (%p4012_p0), [#allocation9], 4096   ;;  %p4013_p2 = pmov %p4012_p0 }
  0xd9   : > { %s369_s3 = sand.u32 1, %s2937_s28   ;;  %p4014_p4 = scmp.ne.s32.totalorder %s3991_s18, 0 }
  0xda   : > { %2902 = vsyncadd (%p4013_p2), [#allocation9], 4294963200  ;;  %s2003_s26 = sshll.u32 %s369_s3, 6 }
  0xdb   : > { %s3438_s10 = scalar_lea.vmem [#allocation10], %s2003_s26 }
  0xdc   : > { %2904 = dma.done.wait (%p4014_p4), %s355_s5, 1024  }
  0xdd   : > { %2906 = vsyncadd (%p4014_p4), %s355_s5, 4294966272  ;;  %s378_s21 = sand.u32 1, %s2925_s25   ;;  %p4015_p12 = scmp.ne.s32.totalorder %s3982_s22, 0 }
  0xde   : > { %s3445_s19 = sshll.u32 %s378_s21, 4 }
  0xdf   : > { %2908 = dma.done.wait (%p4015_p12), %s355_s5, 256  }
  0xe0   : > { %2910 = vsyncadd (%p4015_p12), %s355_s5, 4294967040  ;;  %p4016_p3 = pmov %p4012_p0 }
  0xe1   : > { %p4017_p13 = pmov %p4012_p0 }
  0xe2   : > { %2912 = dma.done.wait (%p4016_p3), [#allocation9], 1024  }
  0xe3   : > { %2914 = vsyncadd (%p4017_p13), [#allocation9], 4294966272  ;;  %s4018_s18 = sld [smem:[#allocation23_spill]]  ;;  %s4019_s27 = sld [smem:[#allocation22_spill]] }
  0xe4   : > { %s4020_s23 = sld [smem:[#allocation21_spill]] }
  0xe9   : > { %p425_p1 = scmp.lt.s32.totalorder %s4018_s18, 2  ;;  %p430_p5 = scmp.eq.s32.totalorder %s4018_s18, 0 }
  0xea   : > { %p431_p9 = scmp.eq.s32.totalorder %s4019_s27, 0  ;;  %p434_p8 = scmp.eq.s32.totalorder %s4020_s23, 0 }
  0xeb   : > { %s4067_s18 = smov (!%p425_p1, %s4018_s18), 2 }
  0xec   : > { %p432_p7 = pnand %p431_p9, %p430_p5 }
  0xee   : > { %p433_p10 = pneg %p432_p7 }
  0xf0   : > { %p435_p6 = pnand %p434_p8, %p433_p10 }
  0xf1   : > { %v2560_v0 = vld [vmem:[#allocation8] sm:$0xff] (!%p435_p6)   ;;  %v2561_v1 = vld [vmem:[#allocation8 + $0x8] sm:$0xff] (!%p435_p6)   ;;  %v2993_v2 = vmov (!%p435_p6), 0.0   ;;  %v2562_v3 = vld [vmem:[#allocation8 + $0x10] sm:$0xff] (!%p435_p6)  }
  0xf2   : > { %438 = sbr.rel (%p435_p6) target bundleno = 259 (0x103), region = 72  ;;  %727 = vst [vmem:[#allocation4] sm:$0xff] (!%p435_p6), %v2993_v2  ;;  %728 = vst [vmem:[#allocation4 + $0x8] sm:$0xff] (!%p435_p6), %v2993_v2  ;;  %v2563_v4 = vld [vmem:[#allocation8 + $0x18] sm:$0xff] (!%p435_p6)   ;;  %v2564_v5 = vld [vmem:[#allocation8 + $0x20] sm:$0xff] (!%p435_p6)  }
  0xf3   : > { %695 = vst [vmem:[#allocation3] sm:$0xff] (!%p435_p6), %v2560_v0  ;;  %696 = vst [vmem:[#allocation3 + $0x8] sm:$0xff] (!%p435_p6), %v2561_v1  ;;  %v2565_v6 = vld [vmem:[#allocation8 + $0x28] sm:$0xff] (!%p435_p6)   ;;  %v2566_v7 = vld [vmem:[#allocation8 + $0x30] sm:$0xff] (!%p435_p6)  }
  0xf4   : > { %697 = vst [vmem:[#allocation3 + $0x10] sm:$0xff] (!%p435_p6), %v2562_v3  ;;  %698 = vst [vmem:[#allocation3 + $0x18] sm:$0xff] (!%p435_p6), %v2563_v4  ;;  %v2567_v8 = vld [vmem:[#allocation8 + $0x38] sm:$0xff] (!%p435_p6)   ;;  %v2568_v9 = vld [vmem:[#allocation8 + $0x40] sm:$0xff] (!%p435_p6)  }
  0xf5   : > { %699 = vst [vmem:[#allocation3 + $0x20] sm:$0xff] (!%p435_p6), %v2564_v5  ;;  %700 = vst [vmem:[#allocation3 + $0x28] sm:$0xff] (!%p435_p6), %v2565_v6  ;;  %v2569_v10 = vld [vmem:[#allocation8 + $0x48] sm:$0xff] (!%p435_p6)   ;;  %v2570_v11 = vld [vmem:[#allocation8 + $0x50] sm:$0xff] (!%p435_p6)  }
  0xf6   : > { %701 = vst [vmem:[#allocation3 + $0x30] sm:$0xff] (!%p435_p6), %v2566_v7  ;;  %702 = vst [vmem:[#allocation3 + $0x38] sm:$0xff] (!%p435_p6), %v2567_v8  ;;  %v2571_v12 = vld [vmem:[#allocation8 + $0x58] sm:$0xff] (!%p435_p6)   ;;  %v2572_v13 = vld [vmem:[#allocation8 + $0x60] sm:$0xff] (!%p435_p6)  }
  0xf7   : > { %703 = vst [vmem:[#allocation3 + $0x40] sm:$0xff] (!%p435_p6), %v2568_v9  ;;  %704 = vst [vmem:[#allocation3 + $0x48] sm:$0xff] (!%p435_p6), %v2569_v10  ;;  %v2573_v14 = vld [vmem:[#allocation8 + $0x68] sm:$0xff] (!%p435_p6)   ;;  %v2574_v15 = vld [vmem:[#allocation8 + $0x70] sm:$0xff] (!%p435_p6)  }
  0xf8   : > { %705 = vst [vmem:[#allocation3 + $0x50] sm:$0xff] (!%p435_p6), %v2570_v11  ;;  %706 = vst [vmem:[#allocation3 + $0x58] sm:$0xff] (!%p435_p6), %v2571_v12  ;;  %v2575_v16 = vld [vmem:[#allocation8 + $0x78] sm:$0xff] (!%p435_p6)   ;;  %v2576_v17 = vld [vmem:[#allocation8 + $0x80] sm:$0xff] (!%p435_p6)  }
  0xf9   : > { %707 = vst [vmem:[#allocation3 + $0x60] sm:$0xff] %v2572_v13  ;;  %708 = vst [vmem:[#allocation3 + $0x68] sm:$0xff] %v2573_v14  ;;  %v2577_v18 = vld [vmem:[#allocation8 + $0x88] sm:$0xff]   ;;  %v2578_v19 = vld [vmem:[#allocation8 + $0x90] sm:$0xff]  }
  0xfa   : > { %709 = vst [vmem:[#allocation3 + $0x70] sm:$0xff] %v2574_v15  ;;  %710 = vst [vmem:[#allocation3 + $0x78] sm:$0xff] %v2575_v16  ;;  %v2579_v20 = vld [vmem:[#allocation8 + $0x98] sm:$0xff]   ;;  %v2580_v21 = vld [vmem:[#allocation8 + $0xa0] sm:$0xff]  }
  0xfb   : > { %711 = vst [vmem:[#allocation3 + $0x80] sm:$0xff] %v2576_v17  ;;  %712 = vst [vmem:[#allocation3 + $0x88] sm:$0xff] %v2577_v18  ;;  %v2581_v22 = vld [vmem:[#allocation8 + $0xa8] sm:$0xff]   ;;  %v2582_v23 = vld [vmem:[#allocation8 + $0xb0] sm:$0xff]  }
  0xfc   : > { %713 = vst [vmem:[#allocation3 + $0x90] sm:$0xff] %v2578_v19  ;;  %714 = vst [vmem:[#allocation3 + $0x98] sm:$0xff] %v2579_v20  ;;  %v2583_v24 = vld [vmem:[#allocation8 + $0xb8] sm:$0xff]   ;;  %v2584_v25 = vld [vmem:[#allocation8 + $0xc0] sm:$0xff]  }
  0xfd   : > { %715 = vst [vmem:[#allocation3 + $0xa0] sm:$0xff] %v2580_v21  ;;  %716 = vst [vmem:[#allocation3 + $0xa8] sm:$0xff] %v2581_v22  ;;  %v2585_v26 = vld [vmem:[#allocation8 + $0xc8] sm:$0xff]   ;;  %v2586_v27 = vld [vmem:[#allocation8 + $0xd0] sm:$0xff]  }
  0xfe   : > { %717 = vst [vmem:[#allocation3 + $0xb0] sm:$0xff] %v2582_v23  ;;  %718 = vst [vmem:[#allocation3 + $0xb8] sm:$0xff] %v2583_v24  ;;  %v2587_v28 = vld [vmem:[#allocation8 + $0xd8] sm:$0xff]   ;;  %v2588_v29 = vld [vmem:[#allocation8 + $0xe0] sm:$0xff]  }
  0xff   : > { %719 = vst [vmem:[#allocation3 + $0xc0] sm:$0xff] %v2584_v25  ;;  %720 = vst [vmem:[#allocation3 + $0xc8] sm:$0xff] %v2585_v26  ;;  %v2589_v30 = vld [vmem:[#allocation8 + $0xe8] sm:$0xff]   ;;  %v2590_v31 = vld [vmem:[#allocation8 + $0xf0] sm:$0xff]  }
 0x100   : > { %721 = vst [vmem:[#allocation3 + $0xd0] sm:$0xff] %v2586_v27  ;;  %722 = vst [vmem:[#allocation3 + $0xd8] sm:$0xff] %v2587_v28  ;;  %v2591_v32 = vld [vmem:[#allocation8 + $0xf8] sm:$0xff]  }
 0x101   : > { %723 = vst [vmem:[#allocation3 + $0xe0] sm:$0xff] %v2588_v29  ;;  %724 = vst [vmem:[#allocation3 + $0xe8] sm:$0xff] %v2589_v30 }
 0x102   : > { %725 = vst [vmem:[#allocation3 + $0xf0] sm:$0xff] %v2590_v31  ;;  %726 = vst [vmem:[#allocation3 + $0xf8] sm:$0xff] %v2591_v32 }
 0x103 PF: > { %s4022_s7 = sld [smem:[#allocation23_spill]]  ;;  %s4023_s2 = sld [smem:[#allocation21_spill]]  ;;  %v2594_v33 = vld [vmem:[%s3427_s6 + $0x4] ss:$8 sps:$4 sm:$0xff]   ;;  %v2592_v51 = vld [vmem:[%s3427_s6] ss:$8 sps:$4 sm:$0xff]  }
 0x104   : > { %s4024_s5 = sld [smem:[#allocation22_spill]]  ;;  %v2597_v34 = vld [vmem:[%s3427_s6 + $0x84] ss:$8 sps:$4 sm:$0xff]   ;;  %992 = vmatprep.mubr.bf16.mxu0 %v2594_v33  ;;  %v2595_v52 = vld [vmem:[%s3427_s6 + $0x80] ss:$8 sps:$4 sm:$0xff]  }
 0x105   : > { %1056 = vmatprep.mubr.bf16.mxu1 %v2597_v34  ;;  %v2598_v53 = vld [vmem:[%s3427_s6 + $0x14] ss:$8 sps:$4 sm:$0xff]   ;;  %v2602_v55 = vld [vmem:[%s3427_s6 + $0x10] ss:$8 sps:$4 sm:$0xff]   ;;  %v2604_v57 = vld [vmem:[%s3427_s6 + $0x24] ss:$8 sps:$4 sm:$0xff]  }
 0x106   : > { %v2600_v54 = vld [vmem:[%s3427_s6 + $0x94] ss:$8 sps:$4 sm:$0xff]   ;;  %v2603_v56 = vld [vmem:[%s3427_s6 + $0x90] ss:$8 sps:$4 sm:$0xff]   ;;  %v2606_v58 = vld [vmem:[%s3427_s6 + $0xa4] ss:$8 sps:$4 sm:$0xff]  }
 0x107   : > { %v2608_v59 = vld [vmem:[%s3427_s6 + $0x20] ss:$8 sps:$4 sm:$0xff]   ;;  %v2610_v61 = vld [vmem:[%s3427_s6 + $0x34] ss:$8 sps:$4 sm:$0xff]   ;;  %v2614_v63 = vld [vmem:[%s3427_s6 + $0x30] ss:$8 sps:$4 sm:$0xff]  }
 0x108   : > { %v2609_v60 = vld [vmem:[%s3427_s6 + $0xa0] ss:$8 sps:$4 sm:$0xff]   ;;  %v2612_v62 = vld [vmem:[%s3427_s6 + $0xb4] ss:$8 sps:$4 sm:$0xff]   ;;  %v2615_v0 = vld [vmem:[%s3427_s6 + $0xb0] ss:$8 sps:$4 sm:$0xff]  }
 0x109   : > { %p729_p11 = scmp.lt.s32.totalorder %s4022_s7, 0  ;;  %s730_s3 = ssub.s32 0, %s4022_s7  ;;  %v2616_v1 = vld [vmem:[%s3427_s6 + $0x44] ss:$8 sps:$4 sm:$0xff]   ;;  %v2620_v3 = vld [vmem:[%s3427_s6 + $0x40] ss:$8 sps:$4 sm:$0xff]  }
 0x10a   : > { %s2038_s26 = smin.u32 %s4022_s7, %s730_s3  ;;  %s2042_s22 = sshll.u32 %s4023_s2, 8  ;;  %v2618_v2 = vld [vmem:[%s3427_s6 + $0xc4] ss:$8 sps:$4 sm:$0xff]   ;;  %v2621_v4 = vld [vmem:[%s3427_s6 + $0xc0] ss:$8 sps:$4 sm:$0xff]  }
 0x10b   : > { %s732_s21 = sand.u32 1, %s2038_s26   ;;  %s2044_s0 = sshll.u32 %s4024_s5, 8  ;;  %v2622_v5 = vld [vmem:[%s3427_s6 + $0x54] ss:$8 sps:$4 sm:$0xff]   ;;  %v2626_v7 = vld [vmem:[%s3427_s6 + $0x50] ss:$8 sps:$4 sm:$0xff]  }
 0x10c   : > { %s733_s27 = ssub.s32 0, %s732_s21  ;;  %v2624_v6 = vld [vmem:[%s3427_s6 + $0xd4] ss:$8 sps:$4 sm:$0xff]   ;;  %v2627_v8 = vld [vmem:[%s3427_s6 + $0xd0] ss:$8 sps:$4 sm:$0xff]   ;;  %p2078_p2 = scmp.ne.s32.totalorder %s4023_s2, 0 }
 0x10d   : > { %s4069_s27 = smov (!%p729_p11, %s733_s27), %s732_s21  ;;  %v2628_v9 = vld [vmem:[%s3427_s6 + $0x64] ss:$8 sps:$4 sm:$0xff]   ;;  %v2632_v11 = vld [vmem:[%s3427_s6 + $0x60] ss:$8 sps:$4 sm:$0xff]   ;;  %v2634_v13 = vld [vmem:[%s3427_s6 + $0x74] ss:$8 sps:$4 sm:$0xff]  }
 0x10e   : > { %p2040_p0 = scmp.lt.s32.totalorder %s4069_s27, 0  ;;  %s739_s23 = sadd.s32 2, %s4069_s27  ;;  %v2630_v10 = vld [vmem:[%s3427_s6 + $0xe4] ss:$8 sps:$4 sm:$0xff]   ;;  %v2633_v12 = vld [vmem:[%s3427_s6 + $0xe0] ss:$8 sps:$4 sm:$0xff]  }
 0x10f   : > { %v2636_v14 = vld [vmem:[%s3427_s6 + $0xf4] ss:$8 sps:$4 sm:$0xff]   ;;  %v2638_v15 = vld [vmem:[%s3427_s6 + $0x70] ss:$8 sps:$4 sm:$0xff]  }
 0x110   : > { %s4071_s23 = smov (!%p2040_p0, %s739_s23), %s4069_s27  ;;  %v2639_v16 = vld [vmem:[%s3427_s6 + $0xf0] ss:$8 sps:$4 sm:$0xff]  }
 0x111   : > { %s2041_s24 = sshll.u32 %s4071_s23, 9  ;;  %s744_s17 = ssub.s32 1, %s4071_s23 }
 0x112   : > { %s743_s12 = sadd.s32 %s2042_s22, %s2041_s24  ;;  %s2043_s1 = sshll.u32 %s744_s17, 9 }
 0x113   : > { %s3476_s4 = sadd.s32 %s2044_s0, %s2043_s1  ;;  %s780_s15 = sshra.s32 %s743_s12, 4 }
 0x114   : > { %s2045_s7 = sshll.u32 %s780_s15, 3 }
 0x115   : > { %s3478_s3 = scalar_lea.vmem [#allocation3], %s2045_s7 }
 0x116   : > { %v792_v35 = vld [vmem:[%s3478_s3 + $0x40] sm:$0xff]  ;;  %v793_v37 = vld [vmem:[%s3478_s3 + $0x48] sm:$0xff]  ;;  %v794_v39 = vld [vmem:[%s3478_s3 + $0x50] sm:$0xff] }
 0x117   : > { %v784_v36 = vld [vmem:[%s3478_s3] sm:$0xff]  ;;  %2110 = vmatprep.subr.bf16.mxu0 %v792_v35  ;;  %2345 = vmatprep.subr.bf16.mxu1 %v792_v35  ;;  %v785_v38 = vld [vmem:[%s3478_s3 + $0x8] sm:$0xff]  ;;  %v786_v40 = vld [vmem:[%s3478_s3 + $0x10] sm:$0xff] }
 0x118   : > { %2111 = vmatpush3.bf16.msra.mxu0 %v784_v36  ;;  %2353 = vmatpush3.bf16.msra.mxu1 %v784_v36  ;;  %v795_v41 = vld [vmem:[%s3478_s3 + $0x58] sm:$0xff]  ;;  %v796_v43 = vld [vmem:[%s3478_s3 + $0x60] sm:$0xff]  ;;  %v797_v45 = vld [vmem:[%s3478_s3 + $0x68] sm:$0xff] }
 0x119   : > { %2112 = vmatprep.subr.bf16.mxu0 %v793_v37  ;;  %2346 = vmatprep.subr.bf16.mxu1 %v793_v37  ;;  %v787_v42 = vld [vmem:[%s3478_s3 + $0x18] sm:$0xff]  ;;  %v788_v44 = vld [vmem:[%s3478_s3 + $0x20] sm:$0xff]  ;;  %v789_v46 = vld [vmem:[%s3478_s3 + $0x28] sm:$0xff] }
 0x11a   : > { %v798_v47 = vld [vmem:[%s3478_s3 + $0x70] sm:$0xff]  ;;  %v799_v49 = vld [vmem:[%s3478_s3 + $0x78] sm:$0xff] }
 0x11b   : > { %v790_v48 = vld [vmem:[%s3478_s3 + $0x30] sm:$0xff]  ;;  %v791_v50 = vld [vmem:[%s3478_s3 + $0x38] sm:$0xff] }
 0x11c   : > { %2113 = vmatpush3.bf16.msra.mxu0 %v785_v38  ;;  %2354 = vmatpush3.bf16.msra.mxu1 %v785_v38 }
 0x11d   : > { %2114 = vmatprep.subr.bf16.mxu0 %v794_v39  ;;  %2347 = vmatprep.subr.bf16.mxu1 %v794_v39 }
 0x120   : > { %2115 = vmatpush3.bf16.msra.mxu0 %v786_v40  ;;  %2355 = vmatpush3.bf16.msra.mxu1 %v786_v40 }
 0x121   : > { %2116 = vmatprep.subr.bf16.mxu0 %v795_v41  ;;  %2348 = vmatprep.subr.bf16.mxu1 %v795_v41 }
 0x124   : > { %2117 = vmatpush3.bf16.msra.mxu0 %v787_v42  ;;  %2356 = vmatpush3.bf16.msra.mxu1 %v787_v42 }
 0x125   : > { %2118 = vmatprep.subr.bf16.mxu0 %v796_v43  ;;  %2349 = vmatprep.subr.bf16.mxu1 %v796_v43 }
 0x128   : > { %2119 = vmatpush3.bf16.msra.mxu0 %v788_v44  ;;  %2357 = vmatpush3.bf16.msra.mxu1 %v788_v44 }
 0x129   : > { %2120 = vmatprep.subr.bf16.mxu0 %v797_v45  ;;  %2350 = vmatprep.subr.bf16.mxu1 %v797_v45 }
 0x12c   : > { %2121 = vmatpush3.bf16.msra.mxu0 %v789_v46  ;;  %2358 = vmatpush3.bf16.msra.mxu1 %v789_v46 }
 0x12d   : > { %2122 = vmatprep.subr.bf16.mxu0 %v798_v47  ;;  %2351 = vmatprep.subr.bf16.mxu1 %v798_v47 }
 0x130   : > { %2123 = vmatpush3.bf16.msra.mxu0 %v790_v48  ;;  %2359 = vmatpush3.bf16.msra.mxu1 %v790_v48 }
 0x131   : > { %2124 = vmatprep.subr.bf16.mxu0 %v799_v49  ;;  %2352 = vmatprep.subr.bf16.mxu1 %v799_v49 }
 0x134   : > { %2125 = vmatpush3.bf16.msra.mxu0 %v791_v50  ;;  %2360 = vmatpush3.bf16.msra.mxu1 %v791_v50 }
 0x137   : > { %993 = vmatmul.mubr.bf16.vlgmr.msra.gmra.mrb[0].mxu0 %v2592_v51  ;;  %1057 = vmatmul.mubr.bf16.vlgmr.msra.gmra.mrb[0].mxu1 %v2595_v52 }
 0x138   : > { %1000 = vmatprep.mubr.bf16.mxu0 %v2598_v53  ;;  %1064 = vmatprep.mubr.bf16.mxu1 %v2600_v54 }
 0x13f   : > { %1001 = vmatmul.mubr.bf16.gmra.mrb[4].mxu0 %v2602_v55  ;;  %1065 = vmatmul.mubr.bf16.gmra.mrb[4].mxu1 %v2603_v56 }
 0x140   : > { %1008 = vmatprep.mubr.bf16.mxu0 %v2604_v57  ;;  %1072 = vmatprep.mubr.bf16.mxu1 %v2606_v58 }
 0x147   : > { %1009 = vmatmul.mubr.bf16.gmra.mrb[8].mxu0 %v2608_v59  ;;  %1073 = vmatmul.mubr.bf16.gmra.mrb[8].mxu1 %v2609_v60 }
 0x148   : > { %1016 = vmatprep.mubr.bf16.mxu0 %v2610_v61  ;;  %1080 = vmatprep.mubr.bf16.mxu1 %v2612_v62 }
 0x14f   : > { %1017 = vmatmul.mubr.bf16.gmra.mrb[12].mxu0 %v2614_v63  ;;  %1081 = vmatmul.mubr.bf16.gmra.mrb[12].mxu1 %v2615_v0 }
 0x150   : > { %1024 = vmatprep.mubr.bf16.mxu0 %v2616_v1  ;;  %1088 = vmatprep.mubr.bf16.mxu1 %v2618_v2 }
 0x157   : > { %1025 = vmatmul.mubr.bf16.gmra.mrb[16].mxu0 %v2620_v3  ;;  %1089 = vmatmul.mubr.bf16.gmra.mrb[16].mxu1 %v2621_v4 }
 0x158   : > { %1032 = vmatprep.mubr.bf16.mxu0 %v2622_v5  ;;  %1096 = vmatprep.mubr.bf16.mxu1 %v2624_v6 }
 0x15f   : > { %1033 = vmatmul.mubr.bf16.gmra.mrb[20].mxu0 %v2626_v7  ;;  %1097 = vmatmul.mubr.bf16.gmra.mrb[20].mxu1 %v2627_v8 }
 0x160   : > { %1040 = vmatprep.mubr.bf16.mxu0 %v2628_v9  ;;  %1104 = vmatprep.mubr.bf16.mxu1 %v2630_v10 }
 0x167   : > { %1041 = vmatmul.mubr.bf16.gmra.mrb[24].mxu0 %v2632_v11  ;;  %1105 = vmatmul.mubr.bf16.gmra.mrb[24].mxu1 %v2633_v12 }
 0x168   : > { %1048 = vmatprep.mubr.bf16.mxu0 %v2634_v13  ;;  %1112 = vmatprep.mubr.bf16.mxu1 %v2636_v14 }
 0x16f   : > { %1049 = vmatmul.mubr.bf16.gmra.mrb[28].mxu0 %v2638_v15  ;;  %1113 = vmatmul.mubr.bf16.gmra.mrb[28].mxu1 %v2639_v16 }
 0x20a   : > { %v2126_v17 = vpop.f32.mrb[0].mxu0  ;;  %v2174_v18 = vpop.f32.mrb[0].mxu1 }
 0x20b   : > { %v2127_v19 = vpop.f32.mrb[1].mxu0  ;;  %v2175_v20 = vpop.f32.mrb[1].mxu1 }
 0x20c   : > { %v3526_v21 = vadd.f32 %v2127_v19, %v2126_v17  ;;  %v3528_v22 = vadd.f32 %v2175_v20, %v2174_v18  ;;  %v2129_v23 = vpop.f32.mrb[2].mxu0  ;;  %v2177_v24 = vpop.f32.mrb[2].mxu1 }
 0x20d   : > { %v2130_v25 = vpop.f32.mrb[3].mxu0  ;;  %v2178_v26 = vpop.f32.mrb[3].mxu1 }
 0x20e   : > { %v3530_v27 = vadd.f32 %v2130_v25, %v2129_v23  ;;  %v3532_v28 = vadd.f32 %v2178_v26, %v2177_v24  ;;  %1124 = vst [vmem:[#allocation2] sm:$0xff] (!%p2078_p2), %v3526_v21  ;;  %1140 = vst [vmem:[#allocation2 + $0x80] sm:$0xff] (!%p2078_p2), %v3528_v22 }
 0x210   : > { %1125 = vst [vmem:[#allocation2 + $0x8] sm:$0xff] (!%p2078_p2), %v3530_v27  ;;  %1141 = vst [vmem:[#allocation2 + $0x88] sm:$0xff] (!%p2078_p2), %v3532_v28 }
 0x212   : > { %v2132_v29 = vpop.f32.mrb[4].mxu0  ;;  %v2180_v30 = vpop.f32.mrb[4].mxu1 }
 0x213   : > { %v2133_v31 = vpop.f32.mrb[5].mxu0  ;;  %v2181_v32 = vpop.f32.mrb[5].mxu1 }
 0x214   : > { %v3534_v33 = vadd.f32 %v2133_v31, %v2132_v29  ;;  %v3536_v34 = vadd.f32 %v2181_v32, %v2180_v30  ;;  %v2135_v35 = vpop.f32.mrb[6].mxu0  ;;  %v2183_v36 = vpop.f32.mrb[6].mxu1 }
 0x215   : > { %v2136_v37 = vpop.f32.mrb[7].mxu0  ;;  %v2184_v38 = vpop.f32.mrb[7].mxu1 }
 0x216   : > { %v3538_v39 = vadd.f32 %v2136_v37, %v2135_v35  ;;  %v3540_v40 = vadd.f32 %v2184_v38, %v2183_v36  ;;  %1126 = vst [vmem:[#allocation2 + $0x10] sm:$0xff] (!%p2078_p2), %v3534_v33  ;;  %1142 = vst [vmem:[#allocation2 + $0x90] sm:$0xff] (!%p2078_p2), %v3536_v34 }
 0x218   : > { %1127 = vst [vmem:[#allocation2 + $0x18] sm:$0xff] (!%p2078_p2), %v3538_v39  ;;  %1143 = vst [vmem:[#allocation2 + $0x98] sm:$0xff] (!%p2078_p2), %v3540_v40 }
 0x21a   : > { %v2138_v41 = vpop.f32.mrb[8].mxu0  ;;  %v2186_v42 = vpop.f32.mrb[8].mxu1 }
 0x21b   : > { %v2139_v43 = vpop.f32.mrb[9].mxu0  ;;  %v2187_v44 = vpop.f32.mrb[9].mxu1 }
 0x21c   : > { %v3542_v45 = vadd.f32 %v2139_v43, %v2138_v41  ;;  %v3544_v46 = vadd.f32 %v2187_v44, %v2186_v42  ;;  %v2141_v47 = vpop.f32.mrb[10].mxu0  ;;  %v2189_v48 = vpop.f32.mrb[10].mxu1 }
 0x21d   : > { %v2142_v49 = vpop.f32.mrb[11].mxu0  ;;  %v2190_v50 = vpop.f32.mrb[11].mxu1 }
 0x21e   : > { %v3546_v51 = vadd.f32 %v2142_v49, %v2141_v47  ;;  %v3548_v52 = vadd.f32 %v2190_v50, %v2189_v48  ;;  %1128 = vst [vmem:[#allocation2 + $0x20] sm:$0xff] (!%p2078_p2), %v3542_v45  ;;  %1144 = vst [vmem:[#allocation2 + $0xa0] sm:$0xff] (!%p2078_p2), %v3544_v46 }
 0x220   : > { %1129 = vst [vmem:[#allocation2 + $0x28] sm:$0xff] (!%p2078_p2), %v3546_v51  ;;  %1145 = vst [vmem:[#allocation2 + $0xa8] sm:$0xff] (!%p2078_p2), %v3548_v52 }
 0x222   : > { %v2144_v53 = vpop.f32.mrb[12].mxu0  ;;  %v2192_v54 = vpop.f32.mrb[12].mxu1 }
 0x223   : > { %v2145_v55 = vpop.f32.mrb[13].mxu0  ;;  %v2193_v56 = vpop.f32.mrb[13].mxu1 }
 0x224   : > { %v3550_v57 = vadd.f32 %v2145_v55, %v2144_v53  ;;  %v3552_v58 = vadd.f32 %v2193_v56, %v2192_v54  ;;  %v2147_v59 = vpop.f32.mrb[14].mxu0  ;;  %v2195_v60 = vpop.f32.mrb[14].mxu1 }
 0x225   : > { %v2148_v61 = vpop.f32.mrb[15].mxu0  ;;  %v2196_v62 = vpop.f32.mrb[15].mxu1 }
 0x226   : > { %v3554_v63 = vadd.f32 %v2148_v61, %v2147_v59  ;;  %v3556_v0 = vadd.f32 %v2196_v62, %v2195_v60  ;;  %1130 = vst [vmem:[#allocation2 + $0x30] sm:$0xff] (!%p2078_p2), %v3550_v57  ;;  %1146 = vst [vmem:[#allocation2 + $0xb0] sm:$0xff] (!%p2078_p2), %v3552_v58 }
 0x228   : > { %1131 = vst [vmem:[#allocation2 + $0x38] sm:$0xff] (!%p2078_p2), %v3554_v63  ;;  %1147 = vst [vmem:[#allocation2 + $0xb8] sm:$0xff] (!%p2078_p2), %v3556_v0 }
 0x22a   : > { %v2150_v1 = vpop.f32.mrb[16].mxu0  ;;  %v2198_v2 = vpop.f32.mrb[16].mxu1 }
 0x22b   : > { %v2151_v3 = vpop.f32.mrb[17].mxu0  ;;  %v2199_v4 = vpop.f32.mrb[17].mxu1 }
 0x22c   : > { %v3558_v5 = vadd.f32 %v2151_v3, %v2150_v1  ;;  %v3560_v6 = vadd.f32 %v2199_v4, %v2198_v2  ;;  %v2153_v7 = vpop.f32.mrb[18].mxu0  ;;  %v2201_v8 = vpop.f32.mrb[18].mxu1 }
 0x22d   : > { %v2154_v9 = vpop.f32.mrb[19].mxu0  ;;  %v2202_v10 = vpop.f32.mrb[19].mxu1 }
 0x22e   : > { %v3562_v11 = vadd.f32 %v2154_v9, %v2153_v7  ;;  %v3564_v12 = vadd.f32 %v2202_v10, %v2201_v8  ;;  %1132 = vst [vmem:[#allocation2 + $0x40] sm:$0xff] (!%p2078_p2), %v3558_v5  ;;  %1148 = vst [vmem:[#allocation2 + $0xc0] sm:$0xff] (!%p2078_p2), %v3560_v6 }
 0x230   : > { %1133 = vst [vmem:[#allocation2 + $0x48] sm:$0xff] (!%p2078_p2), %v3562_v11  ;;  %1149 = vst [vmem:[#allocation2 + $0xc8] sm:$0xff] (!%p2078_p2), %v3564_v12 }
 0x232   : > { %v2156_v13 = vpop.f32.mrb[20].mxu0  ;;  %v2204_v14 = vpop.f32.mrb[20].mxu1 }
 0x233   : > { %v2157_v15 = vpop.f32.mrb[21].mxu0  ;;  %v2205_v16 = vpop.f32.mrb[21].mxu1 }
 0x234   : > { %v3566_v17 = vadd.f32 %v2157_v15, %v2156_v13  ;;  %v3568_v18 = vadd.f32 %v2205_v16, %v2204_v14  ;;  %v2159_v19 = vpop.f32.mrb[22].mxu0  ;;  %v2207_v20 = vpop.f32.mrb[22].mxu1 }
 0x235   : > { %v2160_v23 = vpop.f32.mrb[23].mxu0  ;;  %v2208_v24 = vpop.f32.mrb[23].mxu1 }
 0x236   : > { %v3570_v25 = vadd.f32 %v2160_v23, %v2159_v19  ;;  %v3572_v26 = vadd.f32 %v2208_v24, %v2207_v20  ;;  %1134 = vst [vmem:[#allocation2 + $0x50] sm:$0xff] (!%p2078_p2), %v3566_v17  ;;  %1150 = vst [vmem:[#allocation2 + $0xd0] sm:$0xff] (!%p2078_p2), %v3568_v18 }
 0x238   : > { %1135 = vst [vmem:[#allocation2 + $0x58] sm:$0xff] (!%p2078_p2), %v3570_v25  ;;  %1151 = vst [vmem:[#allocation2 + $0xd8] sm:$0xff] (!%p2078_p2), %v3572_v26 }
 0x23a   : > { %v2162_v29 = vpop.f32.mrb[24].mxu0  ;;  %v2210_v30 = vpop.f32.mrb[24].mxu1 }
 0x23b   : > { %v2163_v31 = vpop.f32.mrb[25].mxu0  ;;  %v2211_v32 = vpop.f32.mrb[25].mxu1 }
 0x23c   : > { %v3574_v35 = vadd.f32 %v2163_v31, %v2162_v29  ;;  %v3576_v36 = vadd.f32 %v2211_v32, %v2210_v30  ;;  %v2165_v37 = vpop.f32.mrb[26].mxu0  ;;  %v2213_v38 = vpop.f32.mrb[26].mxu1 }
 0x23d   : > { %v2166_v41 = vpop.f32.mrb[27].mxu0  ;;  %v2214_v42 = vpop.f32.mrb[27].mxu1 }
 0x23e   : > { %v3578_v43 = vadd.f32 %v2166_v41, %v2165_v37  ;;  %v3580_v44 = vadd.f32 %v2214_v42, %v2213_v38  ;;  %1136 = vst [vmem:[#allocation2 + $0x60] sm:$0xff] (!%p2078_p2), %v3574_v35  ;;  %1152 = vst [vmem:[#allocation2 + $0xe0] sm:$0xff] (!%p2078_p2), %v3576_v36 }
 0x240   : > { %1123 = sbr.rel (%p2078_p2) target bundleno = 585 (0x249), region = 76  ;;  %1137 = vst [vmem:[#allocation2 + $0x68] sm:$0xff] (!%p2078_p2), %v3578_v43  ;;  %1153 = vst [vmem:[#allocation2 + $0xe8] sm:$0xff] (!%p2078_p2), %v3580_v44 }
 0x242   : > { %v2168_v47 = vpop.f32.mrb[28].mxu0  ;;  %v2216_v48 = vpop.f32.mrb[28].mxu1 }
 0x243   : > { %v2169_v49 = vpop.f32.mrb[29].mxu0  ;;  %v2217_v50 = vpop.f32.mrb[29].mxu1 }
 0x244   : > { %v3582_v53 = vadd.f32 %v2169_v49, %v2168_v47  ;;  %v3584_v54 = vadd.f32 %v2217_v50, %v2216_v48  ;;  %v2171_v55 = vpop.f32.mrb[30].mxu0  ;;  %v2219_v56 = vpop.f32.mrb[30].mxu1 }
 0x245   : > { %v2172_v59 = vpop.f32.mrb[31].mxu0  ;;  %v2220_v60 = vpop.f32.mrb[31].mxu1 }
 0x246   : > { %v3586_v61 = vadd.f32 %v2172_v59, %v2171_v55  ;;  %v3588_v62 = vadd.f32 %v2220_v60, %v2219_v56  ;;  %1138 = vst [vmem:[#allocation2 + $0x70] sm:$0xff] (!%p2078_p2), %v3582_v53  ;;  %1154 = vst [vmem:[#allocation2 + $0xf0] sm:$0xff] (!%p2078_p2), %v3584_v54 }
 0x248   : > { %1139 = vst [vmem:[#allocation2 + $0x78] sm:$0xff] %v3586_v61  ;;  %1155 = vst [vmem:[#allocation2 + $0xf8] sm:$0xff] %v3588_v62 }
 0x249 PF: > { %s4025_s15 = sld [smem:[#allocation21_spill]] }
 0x24f   : > { %p2079_p4 = scmp.le.s32.totalorder %s4025_s15, 0 }
 0x250   : > { %v1160_v1 = vld [vmem:[#allocation2] sm:$0xff] (!%p2079_p4)  ;;  %v1161_v2 = vld [vmem:[#allocation2 + $0x8] sm:$0xff] (!%p2079_p4)  ;;  %v1162_v3 = vld [vmem:[#allocation2 + $0x10] sm:$0xff] (!%p2079_p4) }
 0x251   : > { %1159 = sbr.rel (%p2079_p4) target bundleno = 611 (0x263), region = 80  ;;  %v1192_v4 = vadd.f32 (!%p2079_p4), %v3526_v21, %v1160_v1  ;;  %v1193_v7 = vadd.f32 (!%p2079_p4), %v3530_v27, %v1161_v2  ;;  %v1194_v8 = vadd.f32 (!%p2079_p4), %v3534_v33, %v1162_v3  ;;  %v1163_v9 = vld [vmem:[#allocation2 + $0x18] sm:$0xff] (!%p2079_p4)  ;;  %v1164_v10 = vld [vmem:[#allocation2 + $0x20] sm:$0xff] (!%p2079_p4)  ;;  %v1165_v13 = vld [vmem:[#allocation2 + $0x28] sm:$0xff] (!%p2079_p4) }
 0x252   : > { %v1195_v14 = vadd.f32 (!%p2079_p4), %v3538_v39, %v1163_v9  ;;  %v1196_v15 = vadd.f32 (!%p2079_p4), %v3542_v45, %v1164_v10  ;;  %v1197_v16 = vadd.f32 (!%p2079_p4), %v3546_v51, %v1165_v13  ;;  %v1166_v19 = vld [vmem:[#allocation2 + $0x30] sm:$0xff] (!%p2079_p4)  ;;  %v1167_v20 = vld [vmem:[#allocation2 + $0x38] sm:$0xff] (!%p2079_p4)  ;;  %v1168_v23 = vld [vmem:[#allocation2 + $0x40] sm:$0xff] (!%p2079_p4) }
 0x253   : > { %1224 = vst [vmem:[#allocation2] sm:$0xff] (!%p2079_p4), %v1192_v4  ;;  %1225 = vst [vmem:[#allocation2 + $0x8] sm:$0xff] (!%p2079_p4), %v1193_v7  ;;  %v1198_v21 = vadd.f32 (!%p2079_p4), %v3550_v57, %v1166_v19  ;;  %v1199_v27 = vadd.f32 (!%p2079_p4), %v3554_v63, %v1167_v20  ;;  %v1200_v33 = vadd.f32 (!%p2079_p4), %v3558_v5, %v1168_v23  ;;  %v1169_v24 = vld [vmem:[#allocation2 + $0x48] sm:$0xff] (!%p2079_p4)  ;;  %v1170_v29 = vld [vmem:[#allocation2 + $0x50] sm:$0xff] (!%p2079_p4) }
 0x254   : > { %1226 = vst [vmem:[#allocation2 + $0x10] sm:$0xff] (!%p2079_p4), %v1194_v8  ;;  %v1171_v30 = vld [vmem:[#allocation2 + $0x58] sm:$0xff] (!%p2079_p4)  ;;  %1227 = vst [vmem:[#allocation2 + $0x18] sm:$0xff] (!%p2079_p4), %v1195_v14  ;;  %v1201_v39 = vadd.f32 (!%p2079_p4), %v3562_v11, %v1169_v24  ;;  %v1202_v45 = vadd.f32 (!%p2079_p4), %v3566_v17, %v1170_v29  ;;  %v1172_v31 = vld [vmem:[#allocation2 + $0x60] sm:$0xff] (!%p2079_p4) }
 0x255   : > { %1228 = vst [vmem:[#allocation2 + $0x20] sm:$0xff] (!%p2079_p4), %v1196_v15  ;;  %1229 = vst [vmem:[#allocation2 + $0x28] sm:$0xff] (!%p2079_p4), %v1197_v16  ;;  %v1203_v51 = vadd.f32 (!%p2079_p4), %v3570_v25, %v1171_v30  ;;  %v1173_v32 = vld [vmem:[#allocation2 + $0x68] sm:$0xff] (!%p2079_p4)  ;;  %v1174_v37 = vld [vmem:[#allocation2 + $0x70] sm:$0xff] (!%p2079_p4)  ;;  %v1204_v57 = vadd.f32 (!%p2079_p4), %v3574_v35, %v1172_v31 }
 0x256   : > { %1230 = vst [vmem:[#allocation2 + $0x30] sm:$0xff] (!%p2079_p4), %v1198_v21  ;;  %1231 = vst [vmem:[#allocation2 + $0x38] sm:$0xff] (!%p2079_p4), %v1199_v27  ;;  %v1205_v63 = vadd.f32 (!%p2079_p4), %v3578_v43, %v1173_v32  ;;  %v1206_v5 = vadd.f32 (!%p2079_p4), %v3582_v53, %v1174_v37  ;;  %v1175_v38 = vld [vmem:[#allocation2 + $0x78] sm:$0xff] (!%p2079_p4)  ;;  %v1176_v41 = vld [vmem:[#allocation2 + $0x80] sm:$0xff] (!%p2079_p4) }
 0x257   : > { %1232 = vst [vmem:[#allocation2 + $0x40] sm:$0xff] (!%p2079_p4), %v1200_v33  ;;  %v1177_v42 = vld [vmem:[#allocation2 + $0x88] sm:$0xff] (!%p2079_p4)  ;;  %1233 = vst [vmem:[#allocation2 + $0x48] sm:$0xff] (!%p2079_p4), %v1201_v39  ;;  %v1207_v11 = vadd.f32 (!%p2079_p4), %v3586_v61, %v1175_v38  ;;  %v1208_v17 = vadd.f32 (!%p2079_p4), %v3528_v22, %v1176_v41  ;;  %v1178_v47 = vld [vmem:[#allocation2 + $0x90] sm:$0xff] (!%p2079_p4) }
 0x258   : > { %1234 = vst [vmem:[#allocation2 + $0x50] sm:$0xff] %v1202_v45  ;;  %1235 = vst [vmem:[#allocation2 + $0x58] sm:$0xff] %v1203_v51  ;;  %v1209_v25 = vadd.f32 %v3532_v28, %v1177_v42  ;;  %v1179_v48 = vld [vmem:[#allocation2 + $0x98] sm:$0xff]  ;;  %v1180_v49 = vld [vmem:[#allocation2 + $0xa0] sm:$0xff]  ;;  %v1210_v35 = vadd.f32 %v3536_v34, %v1178_v47 }
 0x259   : > { %1236 = vst [vmem:[#allocation2 + $0x60] sm:$0xff] %v1204_v57  ;;  %1237 = vst [vmem:[#allocation2 + $0x68] sm:$0xff] %v1205_v63  ;;  %v1211_v43 = vadd.f32 %v3540_v40, %v1179_v48  ;;  %v1212_v50 = vadd.f32 %v3544_v46, %v1180_v49  ;;  %v1181_v53 = vld [vmem:[#allocation2 + $0xa8] sm:$0xff]  ;;  %v1182_v55 = vld [vmem:[#allocation2 + $0xb0] sm:$0xff] }
 0x25a   : > { %1238 = vst [vmem:[#allocation2 + $0x70] sm:$0xff] %v1206_v5  ;;  %v1183_v56 = vld [vmem:[#allocation2 + $0xb8] sm:$0xff]  ;;  %1239 = vst [vmem:[#allocation2 + $0x78] sm:$0xff] %v1207_v11  ;;  %v1213_v22 = vadd.f32 %v3548_v52, %v1181_v53  ;;  %v1214_v28 = vadd.f32 %v3552_v58, %v1182_v55  ;;  %v1184_v60 = vld [vmem:[#allocation2 + $0xc0] sm:$0xff] }
 0x25b   : > { %1240 = vst [vmem:[#allocation2 + $0x80] sm:$0xff] %v1208_v17  ;;  %1241 = vst [vmem:[#allocation2 + $0x88] sm:$0xff] %v1209_v25  ;;  %v1215_v59 = vadd.f32 %v3556_v0, %v1183_v56  ;;  %v1185_v61 = vld [vmem:[#allocation2 + $0xc8] sm:$0xff]  ;;  %v1186_v1 = vld [vmem:[#allocation2 + $0xd0] sm:$0xff]  ;;  %v1216_v34 = vadd.f32 %v3560_v6, %v1184_v60 }
 0x25c   : > { %1242 = vst [vmem:[#allocation2 + $0x90] sm:$0xff] %v1210_v35  ;;  %1243 = vst [vmem:[#allocation2 + $0x98] sm:$0xff] %v1211_v43  ;;  %v1217_v40 = vadd.f32 %v3564_v12, %v1185_v61  ;;  %v1218_v46 = vadd.f32 %v3568_v18, %v1186_v1  ;;  %v1187_v2 = vld [vmem:[#allocation2 + $0xd8] sm:$0xff]  ;;  %v1188_v3 = vld [vmem:[#allocation2 + $0xe0] sm:$0xff] }
 0x25d   : > { %1244 = vst [vmem:[#allocation2 + $0xa0] sm:$0xff] %v1212_v50  ;;  %v1189_v4 = vld [vmem:[#allocation2 + $0xe8] sm:$0xff]  ;;  %1245 = vst [vmem:[#allocation2 + $0xa8] sm:$0xff] %v1213_v22  ;;  %v1219_v52 = vadd.f32 %v3572_v26, %v1187_v2  ;;  %v1220_v58 = vadd.f32 %v3576_v36, %v1188_v3  ;;  %v1190_v7 = vld [vmem:[#allocation2 + $0xf0] sm:$0xff] }
 0x25e   : > { %1246 = vst [vmem:[#allocation2 + $0xb0] sm:$0xff] %v1214_v28  ;;  %1247 = vst [vmem:[#allocation2 + $0xb8] sm:$0xff] %v1215_v59  ;;  %v1221_v0 = vadd.f32 %v3580_v44, %v1189_v4  ;;  %v1191_v8 = vld [vmem:[#allocation2 + $0xf8] sm:$0xff]  ;;  %v1222_v6 = vadd.f32 %v3584_v54, %v1190_v7 }
 0x25f   : > { %1248 = vst [vmem:[#allocation2 + $0xc0] sm:$0xff] %v1216_v34  ;;  %1249 = vst [vmem:[#allocation2 + $0xc8] sm:$0xff] %v1217_v40  ;;  %v1223_v12 = vadd.f32 %v3588_v62, %v1191_v8 }
 0x260   : > { %1250 = vst [vmem:[#allocation2 + $0xd0] sm:$0xff] %v1218_v46  ;;  %1251 = vst [vmem:[#allocation2 + $0xd8] sm:$0xff] %v1219_v52 }
 0x261   : > { %1252 = vst [vmem:[#allocation2 + $0xe0] sm:$0xff] %v1220_v58  ;;  %1253 = vst [vmem:[#allocation2 + $0xe8] sm:$0xff] %v1221_v0 }
 0x262   : > { %1254 = vst [vmem:[#allocation2 + $0xf0] sm:$0xff] %v1222_v6  ;;  %1255 = vst [vmem:[#allocation2 + $0xf8] sm:$0xff] %v1223_v12 }
 0x263 PF: > { %s4026_s1 = sld [smem:[#allocation21_spill]] }
 0x269   : > { %p1256_p12 = scmp.eq.s32.totalorder %s4026_s1, 1  ;;  %p2080_p3 = scmp.ne.s32.totalorder %s4026_s1, 1 }
 0x26a   : > { %v2640_v18 = vld [vmem:[%s3438_s10] sm:$0xff] (!%p2080_p3)   ;;  %v2641_v26 = vld [vmem:[%s3438_s10 + $0x8] sm:$0xff] (!%p2080_p3)   ;;  %v2642_v36 = vld [vmem:[%s3438_s10 + $0x10] sm:$0xff] (!%p2080_p3)   ;;  %s4027_s6 = sld [smem:[#allocation23_spill]] (!%p2080_p3)  ;;  %s4028_s2 = sld [smem:[#allocation32_spill]] (!%p2080_p3) }
 0x26b   : > { %1259 = sbr.rel (%p2080_p3) target bundleno = 1125 (0x465), region = 84  ;;  %2277 = vmatprep.subr.bf16.mxu0 (!%p2080_p3), %v2640_v18  ;;  %2361 = vmatprep.subr.bf16.mxu1 (!%p2080_p3), %v2640_v18  ;;  %v2643_v44 = vld [vmem:[%s3438_s10 + $0x18] sm:$0xff] (!%p2080_p3)   ;;  %v1260_v54 = vld [vmem:[#allocation2] sm:$0xff] (!%p2080_p3)  ;;  %v2644_v15 = vld [vmem:[%s3438_s10 + $0x20] sm:$0xff] (!%p2080_p3)   ;;  %s1624_s26 = sshra.s32 (!%p2080_p3), %s3476_s4, 4 }
 0x26c   : > { %2278 = vmatpush3.bf16.msra.mxu0 (!%p2080_p3), %v2640_v18  ;;  %2369 = vmatpush3.bf16.msra.mxu1 (!%p2080_p3), %v2640_v18  ;;  %v1261_v62 = vld [vmem:[#allocation2 + $0x8] sm:$0xff] (!%p2080_p3)  ;;  %v1276_v9 = vld [vmem:[#allocation2 + $0x80] sm:$0xff] (!%p2080_p3)  ;;  %v2645_v16 = vld [vmem:[%s3438_s10 + $0x28] sm:$0xff] (!%p2080_p3)   ;;  %s2090_s4 = sshll.u32 (!%p2080_p3), %s1624_s26, 3 }
 0x26d   : > { %2279 = vmatprep.subr.bf16.mxu0 (!%p2080_p3), %v2641_v26  ;;  %2362 = vmatprep.subr.bf16.mxu1 (!%p2080_p3), %v2641_v26  ;;  %v1292_v10 = vpack.c.bf16 (!%p2080_p3), %v1261_v62, %v1260_v54  ;;  %v1277_v13 = vld [vmem:[#allocation2 + $0x88] sm:$0xff] (!%p2080_p3)  ;;  %v2646_v19 = vld [vmem:[%s3438_s10 + $0x30] sm:$0xff] (!%p2080_p3)   ;;  %v1262_v23 = vld [vmem:[#allocation2 + $0x10] sm:$0xff] (!%p2080_p3) }
 0x26e   : > { %v1300_v14 = vpack.c.bf16 (!%p2080_p3), %v1277_v13, %v1276_v9  ;;  %v2647_v20 = vld [vmem:[%s3438_s10 + $0x38] sm:$0xff] (!%p2080_p3)   ;;  %v1263_v21 = vld [vmem:[#allocation2 + $0x18] sm:$0xff] (!%p2080_p3)  ;;  %v1278_v27 = vld [vmem:[#allocation2 + $0x90] sm:$0xff] (!%p2080_p3) }
 0x26f   : > { %2293 = vmatprep.mubr.bf16.mxu0 (!%p2080_p3), %v1292_v10  ;;  %v1279_v33 = vld [vmem:[#allocation2 + $0x98] sm:$0xff] (!%p2080_p3)  ;;  %v1264_v24 = vld [vmem:[#allocation2 + $0x20] sm:$0xff] (!%p2080_p3)  ;;  %v1265_v29 = vld [vmem:[#allocation2 + $0x28] sm:$0xff] (!%p2080_p3)  ;;  %v1293_v45 = vpack.c.bf16 (!%p2080_p3), %v1263_v21, %v1262_v23 }
 0x270   : > { %2280 = vmatpush3.bf16.msra.mxu0 (!%p2080_p3), %v2641_v26  ;;  %2370 = vmatpush3.bf16.msra.mxu1 (!%p2080_p3), %v2641_v26  ;;  %v1280_v30 = vld [vmem:[#allocation2 + $0xa0] sm:$0xff] (!%p2080_p3)  ;;  %v1281_v39 = vld [vmem:[#allocation2 + $0xa8] sm:$0xff] (!%p2080_p3)  ;;  %v1301_v51 = vpack.c.bf16 (!%p2080_p3), %v1279_v33, %v1278_v27  ;;  %v1294_v31 = vpack.c.bf16 (!%p2080_p3), %v1265_v29, %v1264_v24  ;;  %v1266_v37 = vld [vmem:[#allocation2 + $0x30] sm:$0xff] (!%p2080_p3)  ;;  %s4029_s5 = scalar_lea.vmem (!%p2080_p3), %s4028_s2, %s4067_s18  ;;  %s3714_s18 = scalar_lea.vmem (!%p2080_p3), [#allocation3], %s2090_s4 }
 0x271   : > { %2281 = vmatprep.subr.bf16.mxu0 (!%p2080_p3), %v2642_v36  ;;  %2363 = vmatprep.subr.bf16.mxu1 (!%p2080_p3), %v2642_v36  ;;  %v1302_v32 = vpack.c.bf16 (!%p2080_p3), %v1281_v39, %v1280_v30  ;;  %v1267_v57 = vld [vmem:[#allocation2 + $0x38] sm:$0xff] (!%p2080_p3)  ;;  %v1282_v63 = vld [vmem:[#allocation2 + $0xb0] sm:$0xff] (!%p2080_p3)  ;;  %v1268_v38 = vld [vmem:[#allocation2 + $0x40] sm:$0xff] (!%p2080_p3)  ;;  %p2091_p13 = scmp.ne.s32.totalorder (!%p2080_p3), %s4027_s6, 2 }
 0x272   : > { %2309 = vmatprep.mubr.bf16.mxu1 %v1300_v14  ;;  %v1283_v5 = vld [vmem:[#allocation2 + $0xb8] sm:$0xff]  ;;  %v1269_v41 = vld [vmem:[#allocation2 + $0x48] sm:$0xff]  ;;  %v1284_v42 = vld [vmem:[#allocation2 + $0xc0] sm:$0xff]  ;;  %v1295_v17 = vpack.c.bf16 %v1267_v57, %v1266_v37  ;;  %s1573_s10 = scalar_select %p425_p1, 1, 0 }
 0x273   : > { %v1285_v11 = vld [vmem:[#allocation2 + $0xc8] sm:$0xff]  ;;  %v1303_v25 = vpack.c.bf16 %v1283_v5, %v1282_v63  ;;  %v1296_v47 = vpack.c.bf16 %v1269_v41, %v1268_v38  ;;  %v1270_v49 = vld [vmem:[#allocation2 + $0x50] sm:$0xff]  ;;  %v1271_v35 = vld [vmem:[#allocation2 + $0x58] sm:$0xff]  ;;  %s4032_s21 = scalar_lea.vmem (!%p2091_p13), [#allocation11], %s3445_s19 }
 0x274   : > { %2282 = vmatpush3.bf16.msra.mxu0 %v2642_v36  ;;  %2371 = vmatpush3.bf16.msra.mxu1 %v2642_v36  ;;  %v1304_v48 = vpack.c.bf16 %v1285_v11, %v1284_v42  ;;  %v1286_v43 = vld [vmem:[#allocation2 + $0xd0] sm:$0xff]  ;;  %v1287_v50 = vld [vmem:[#allocation2 + $0xd8] sm:$0xff]  ;;  %v1272_v53 = vld [vmem:[#allocation2 + $0x60] sm:$0xff]  ;;  %v1297_v28 = vpack.c.bf16 %v1271_v35, %v1270_v49  ;;  %v1574_v52 = vstv %s1573_s10  ;;  %s4033_s27 = smov (!%p2091_p13), %s4032_s21 }
 0x275   : > { %2283 = vmatprep.subr.bf16.mxu0 %v2643_v44  ;;  %2364 = vmatprep.subr.bf16.mxu1 %v2643_v44  ;;  %v1273_v55 = vld [vmem:[#allocation2 + $0x68] sm:$0xff]  ;;  %v1288_v56 = vld [vmem:[#allocation2 + $0xe0] sm:$0xff]  ;;  %v1305_v59 = vpack.c.bf16 %v1287_v50, %v1286_v43  ;;  %v1274_v1 = vld [vmem:[#allocation2 + $0x70] sm:$0xff]  ;;  %vm3678_vm0 = vcmp.eq.s32.totalorder %v1574_v52, 1 }
 0x276   : > { %v1289_v22 = vld [vmem:[#allocation2 + $0xe8] sm:$0xff]  ;;  %v1298_v60 = vpack.c.bf16 %v1273_v55, %v1272_v53  ;;  %v1275_v34 = vld [vmem:[#allocation2 + $0x78] sm:$0xff]  ;;  %v1290_v40 = vld [vmem:[#allocation2 + $0xf0] sm:$0xff] }
 0x277   : > { %v1306_v61 = vpack.c.bf16 %v1289_v22, %v1288_v56  ;;  %v1291_v46 = vld [vmem:[#allocation2 + $0xf8] sm:$0xff]  ;;  %v1299_v2 = vpack.c.bf16 %v1275_v34, %v1274_v1  ;;  %v3673_v4 = vld [vmem:[%s4029_s5] ss:$0 sm:$0xff] }
 0x278   : > { %2284 = vmatpush3.bf16.msra.mxu0 %v2643_v44  ;;  %2372 = vmatpush3.bf16.msra.mxu1 %v2643_v44  ;;  %v1307_v3 = vpack.c.bf16 %v1291_v46, %v1290_v40  ;;  %v2648_v18 = vld [vmem:[%s4033_s27] ss:$8 sps:$4 sm:$0xff] (!%p2091_p13)  }
 0x279   : > { %2285 = vmatprep.subr.bf16.mxu0 %v2644_v15  ;;  %2365 = vmatprep.subr.bf16.mxu1 %v2644_v15 }
 0x27c   : > { %2286 = vmatpush3.bf16.msra.mxu0 %v2644_v15  ;;  %2373 = vmatpush3.bf16.msra.mxu1 %v2644_v15 }
 0x27d   : > { %2287 = vmatprep.subr.bf16.mxu0 %v2645_v16  ;;  %2366 = vmatprep.subr.bf16.mxu1 %v2645_v16 }
 0x280   : > { %2288 = vmatpush3.bf16.msra.mxu0 %v2645_v16  ;;  %2374 = vmatpush3.bf16.msra.mxu1 %v2645_v16 }
 0x281   : > { %2289 = vmatprep.subr.bf16.mxu0 %v2646_v19  ;;  %2367 = vmatprep.subr.bf16.mxu1 %v2646_v19 }
 0x284   : > { %2290 = vmatpush3.bf16.msra.mxu0 %v2646_v19  ;;  %2375 = vmatpush3.bf16.msra.mxu1 %v2646_v19 }
 0x285   : > { %2291 = vmatprep.subr.bf16.mxu0 %v2647_v20  ;;  %2368 = vmatprep.subr.bf16.mxu1 %v2647_v20 }
 0x288   : > { %2292 = vmatpush3.bf16.msra.mxu0 %v2647_v20  ;;  %2376 = vmatpush3.bf16.msra.mxu1 %v2647_v20 }
 0x28b   : > { %2294 = vmatmul.mubr.bf16.vlgmr.msra.gmra.mrb[0].mxu0 %v1293_v45  ;;  %2310 = vmatmul.mubr.bf16.vlgmr.msra.gmra.mrb[0].mxu1 %v1301_v51 }
 0x28c   : > { %2297 = vmatprep.mubr.bf16.mxu0 %v1294_v31  ;;  %2313 = vmatprep.mubr.bf16.mxu1 %v1302_v32 }
 0x293   : > { %2298 = vmatmul.mubr.bf16.gmra.mrb[4].mxu0 %v1295_v17  ;;  %2314 = vmatmul.mubr.bf16.gmra.mrb[4].mxu1 %v1303_v25 }
 0x294   : > { %2301 = vmatprep.mubr.bf16.mxu0 %v1296_v47  ;;  %2317 = vmatprep.mubr.bf16.mxu1 %v1304_v48 }
 0x29b   : > { %2302 = vmatmul.mubr.bf16.gmra.mrb[8].mxu0 %v1297_v28  ;;  %2318 = vmatmul.mubr.bf16.gmra.mrb[8].mxu1 %v1305_v59 }
 0x29c   : > { %2305 = vmatprep.mubr.bf16.mxu0 %v1298_v60  ;;  %2321 = vmatprep.mubr.bf16.mxu1 %v1306_v61 }
 0x2a3   : > { %2306 = vmatmul.mubr.bf16.gmra.mrb[12].mxu0 %v1299_v2  ;;  %2322 = vmatmul.mubr.bf16.gmra.mrb[12].mxu1 %v1307_v3 }
 0x35e   : > { %v2295_v58 = vpop.f32.mrb[0].mxu0  ;;  %v2311_v0 = vpop.f32.mrb[0].mxu1 }
 0x35f   : > { %v1422_v7 = vadd.f32 %v2295_v58, %v3673_v4  ;;  %v1486_v8 = vadd.f32 %v2311_v0, %v3673_v4  ;;  %v1413_v6 = vpop.f32.mrb[1].mxu0  ;;  %v1477_v12 = vpop.f32.mrb[1].mxu1 }
 0x360   : > { %v1414_v26 = vadd.f32 %v3673_v4, %v1413_v6  ;;  %v1478_v36 = vadd.f32 %v3673_v4, %v1477_v12  ;;  %v2296_v44 = vpop.f32.mrb[2].mxu0  ;;  %v2312_v54 = vpop.f32.mrb[2].mxu1 }
 0x361   : > { %v1543_v62 = vmax.f32 %v1422_v7, 0.0  ;;  %v1559_v9 = vmax.f32 %v1486_v8, 0.0  ;;  %v1425_v10 = vadd.f32 %v2296_v44, %v3673_v4  ;;  %v1489_v13 = vadd.f32 %v2312_v54, %v3673_v4  ;;  %v1416_v14 = vpop.f32.mrb[3].mxu0  ;;  %v1480_v15 = vpop.f32.mrb[3].mxu1 }
 0x362   : > { %v1541_v16 = vmax.f32 %v1414_v26, 0.0  ;;  %v1557_v19 = vmax.f32 %v1478_v36, 0.0  ;;  %v1417_v20 = vadd.f32 %v3673_v4, %v1416_v14  ;;  %v1481_v23 = vadd.f32 %v3673_v4, %v1480_v15 }
 0x363   : > { %v1544_v21 = vmax.f32 %v1425_v10, 0.0  ;;  %v1560_v27 = vmax.f32 %v1489_v13, 0.0  ;;  %v1578_v33 = vsel %vm3678_vm0, %v1543_v62, %v1422_v7  ;;  %v1594_v24 = vsel %vm3678_vm0, %v1559_v9, %v1486_v8 }
 0x364   : > { %v1542_v29 = vmax.f32 %v1417_v20, 0.0  ;;  %v1558_v30 = vmax.f32 %v1481_v23, 0.0  ;;  %v1576_v39 = vsel %vm3678_vm0, %v1541_v16, %v1414_v26  ;;  %v1592_v45 = vsel %vm3678_vm0, %v1557_v19, %v1478_v36 }
 0x365   : > { %v1579_v51 = vsel %vm3678_vm0, %v1544_v21, %v1425_v10  ;;  %v1595_v31 = vsel %vm3678_vm0, %v1560_v27, %v1489_v13 }
 0x366   : > { %v3700_v32 = vpack.c.bf16 %v1579_v51, %v1578_v33  ;;  %v3702_v37 = vpack.c.bf16 %v1595_v31, %v1594_v24  ;;  %v1577_v57 = vsel %vm3678_vm0, %v1542_v29, %v1417_v20  ;;  %v1593_v63 = vsel %vm3678_vm0, %v1558_v30, %v1481_v23  ;;  %v2299_v5 = vpop.f32.mrb[4].mxu0  ;;  %v2315_v38 = vpop.f32.mrb[4].mxu1 }
 0x367   : > { %v3708_v41 = vpack.c.bf16 %v1577_v57, %v1576_v39  ;;  %v3710_v42 = vpack.c.bf16 %v1593_v63, %v1592_v45  ;;  %v1438_v11 = vadd.f32 %v2299_v5, %v3673_v4  ;;  %v1502_v17 = vadd.f32 %v2315_v38, %v3673_v4  ;;  %v1429_v25 = vpop.f32.mrb[5].mxu0  ;;  %v1493_v47 = vpop.f32.mrb[5].mxu1 }
 0x368   : > { %1629 = vst [vmem:[%s3714_s18 + $0x8] sm:$0xff] %v3700_v32  ;;  %1637 = vst [vmem:[%s3714_s18 + $0x48] sm:$0xff] %v3702_v37  ;;  %v1430_v48 = vadd.f32 %v3673_v4, %v1429_v25  ;;  %v1494_v49 = vadd.f32 %v3673_v4, %v1493_v47  ;;  %v2300_v35 = vpop.f32.mrb[6].mxu0  ;;  %v2316_v43 = vpop.f32.mrb[6].mxu1 }
 0x369   : > { %1628 = vst [vmem:[%s3714_s18] sm:$0xff] %v3708_v41  ;;  %1636 = vst [vmem:[%s3714_s18 + $0x40] sm:$0xff] %v3710_v42  ;;  %v1547_v50 = vmax.f32 %v1438_v11, 0.0  ;;  %v1563_v53 = vmax.f32 %v1502_v17, 0.0  ;;  %v1441_v55 = vadd.f32 %v2300_v35, %v3673_v4  ;;  %v1505_v56 = vadd.f32 %v2316_v43, %v3673_v4  ;;  %v1432_v22 = vpop.f32.mrb[7].mxu0  ;;  %v1496_v28 = vpop.f32.mrb[7].mxu1  ;;  %2246 = vmatprep.subr.bf16.mxu0 (!%p2091_p13), %v3710_v42 }
 0x36a   : > { %v1545_v59 = vmax.f32 %v1430_v48, 0.0  ;;  %v1561_v60 = vmax.f32 %v1494_v49, 0.0  ;;  %v1433_v61 = vadd.f32 %v3673_v4, %v1432_v22  ;;  %v1497_v1 = vadd.f32 %v3673_v4, %v1496_v28  ;;  %2247 = vmatpush3.bf16.msra.mxu0 (!%p2091_p13), %v3708_v41 }
 0x36b   : > { %v1548_v34 = vmax.f32 %v1441_v55, 0.0  ;;  %v1564_v40 = vmax.f32 %v1505_v56, 0.0  ;;  %v1582_v46 = vsel %vm3678_vm0, %v1547_v50, %v1438_v11  ;;  %v1598_v2 = vsel %vm3678_vm0, %v1563_v53, %v1502_v17  ;;  %2248 = vmatprep.subr.bf16.mxu0 (!%p2091_p13), %v3702_v37  ;;  %v1648_v37 = vld [vmem:[#allocation4] sm:$0xff] (!%p2091_p13) }
 0x36c   : > { %v1546_v3 = vmax.f32 %v1433_v61, 0.0  ;;  %v1562_v52 = vmax.f32 %v1497_v1, 0.0  ;;  %v1580_v58 = vsel %vm3678_vm0, %v1545_v59, %v1430_v48  ;;  %v1596_v0 = vsel %vm3678_vm0, %v1561_v60, %v1494_v49 }
 0x36d   : > { %v1583_v7 = vsel %vm3678_vm0, %v1548_v34, %v1441_v55  ;;  %v1599_v8 = vsel %vm3678_vm0, %v1564_v40, %v1505_v56 }
 0x36e   : > { %v3742_v6 = vpack.c.bf16 %v1583_v7, %v1582_v46  ;;  %v3744_v12 = vpack.c.bf16 %v1599_v8, %v1598_v2  ;;  %v1581_v26 = vsel %vm3678_vm0, %v1546_v3, %v1433_v61  ;;  %v1597_v36 = vsel %vm3678_vm0, %v1562_v52, %v1497_v1  ;;  %v2303_v44 = vpop.f32.mrb[8].mxu0  ;;  %v2319_v54 = vpop.f32.mrb[8].mxu1  ;;  %2249 = vmatpush3.bf16.msra.mxu0 (!%p2091_p13), %v3700_v32 }
 0x36f   : > { %v3750_v62 = vpack.c.bf16 %v1581_v26, %v1580_v58  ;;  %v3752_v9 = vpack.c.bf16 %v1597_v36, %v1596_v0  ;;  %v1454_v10 = vadd.f32 %v2303_v44, %v3673_v4  ;;  %v1518_v13 = vadd.f32 %v2319_v54, %v3673_v4  ;;  %v1445_v14 = vpop.f32.mrb[9].mxu0  ;;  %v1509_v15 = vpop.f32.mrb[9].mxu1 }
 0x370   : > { %1631 = vst [vmem:[%s3714_s18 + $0x18] sm:$0xff] %v3742_v6  ;;  %1639 = vst [vmem:[%s3714_s18 + $0x58] sm:$0xff] %v3744_v12  ;;  %v1446_v16 = vadd.f32 %v3673_v4, %v1445_v14  ;;  %v1510_v19 = vadd.f32 %v3673_v4, %v1509_v15  ;;  %v2304_v20 = vpop.f32.mrb[10].mxu0  ;;  %v2320_v23 = vpop.f32.mrb[10].mxu1 }
 0x371   : > { %1630 = vst [vmem:[%s3714_s18 + $0x10] sm:$0xff] %v3750_v62  ;;  %1638 = vst [vmem:[%s3714_s18 + $0x50] sm:$0xff] %v3752_v9  ;;  %v1551_v21 = vmax.f32 %v1454_v10, 0.0  ;;  %v1567_v27 = vmax.f32 %v1518_v13, 0.0  ;;  %v1457_v33 = vadd.f32 %v2304_v20, %v3673_v4  ;;  %v1521_v24 = vadd.f32 %v2320_v23, %v3673_v4  ;;  %v1448_v29 = vpop.f32.mrb[11].mxu0  ;;  %v1512_v30 = vpop.f32.mrb[11].mxu1  ;;  %2250 = vmatprep.subr.bf16.mxu0 (!%p2091_p13), %v3752_v9 }
 0x372   : > { %v1549_v39 = vmax.f32 %v1446_v16, 0.0  ;;  %v1565_v45 = vmax.f32 %v1510_v19, 0.0  ;;  %v1449_v51 = vadd.f32 %v3673_v4, %v1448_v29  ;;  %v1513_v31 = vadd.f32 %v3673_v4, %v1512_v30  ;;  %2251 = vmatpush3.bf16.msra.mxu0 (!%p2091_p13), %v3750_v62 }
 0x373   : > { %v1552_v57 = vmax.f32 %v1457_v33, 0.0  ;;  %v1568_v63 = vmax.f32 %v1521_v24, 0.0  ;;  %v1586_v5 = vsel %vm3678_vm0, %v1551_v21, %v1454_v10  ;;  %v1602_v38 = vsel %vm3678_vm0, %v1567_v27, %v1518_v13  ;;  %2252 = vmatprep.subr.bf16.mxu0 (!%p2091_p13), %v3744_v12  ;;  %v1649_v12 = vld [vmem:[#allocation4 + $0x8] sm:$0xff] (!%p2091_p13) }
 0x374   : > { %v1550_v11 = vmax.f32 %v1449_v51, 0.0  ;;  %v1566_v17 = vmax.f32 %v1513_v31, 0.0  ;;  %v1584_v25 = vsel %vm3678_vm0, %v1549_v39, %v1446_v16  ;;  %v1600_v47 = vsel %vm3678_vm0, %v1565_v45, %v1510_v19  ;;  %v2650_v45 = vld [vmem:[%s4032_s21 + $0x4] ss:$8 sps:$4 sm:$0xff] (!%p2091_p13)  }
 0x375   : > { %v1587_v48 = vsel %vm3678_vm0, %v1552_v57, %v1457_v33  ;;  %v1603_v49 = vsel %vm3678_vm0, %v1568_v63, %v1521_v24  ;;  %1694 = vmatprep.mubr.bf16.mxu0 (!%p2091_p13), %v2650_v45 }
 0x376   : > { %v3782_v35 = vpack.c.bf16 %v1587_v48, %v1586_v5  ;;  %v1621_v43 = vpack.c.bf16 %v1603_v49, %v1602_v38  ;;  %v1585_v50 = vsel %vm3678_vm0, %v1550_v11, %v1449_v51  ;;  %v1601_v53 = vsel %vm3678_vm0, %v1566_v17, %v1513_v31  ;;  %v2307_v55 = vpop.f32.mrb[12].mxu0  ;;  %v2323_v56 = vpop.f32.mrb[12].mxu1  ;;  %2253 = vmatpush3.bf16.msra.mxu0 (!%p2091_p13), %v3742_v6 }
 0x377   : > { %v1612_v22 = vpack.c.bf16 %v1585_v50, %v1584_v25  ;;  %v1620_v28 = vpack.c.bf16 %v1601_v53, %v1600_v47  ;;  %v1470_v59 = vadd.f32 %v2307_v55, %v3673_v4  ;;  %v1534_v60 = vadd.f32 %v2323_v56, %v3673_v4  ;;  %v1461_v61 = vpop.f32.mrb[13].mxu0  ;;  %v1525_v1 = vpop.f32.mrb[13].mxu1 }
 0x378   : > { %1633 = vst [vmem:[%s3714_s18 + $0x28] sm:$0xff] %v3782_v35  ;;  %1641 = vst [vmem:[%s3714_s18 + $0x68] sm:$0xff] %v1621_v43  ;;  %v1462_v34 = vadd.f32 %v3673_v4, %v1461_v61  ;;  %v1526_v40 = vadd.f32 %v3673_v4, %v1525_v1  ;;  %v2308_v46 = vpop.f32.mrb[14].mxu0  ;;  %v2324_v2 = vpop.f32.mrb[14].mxu1 }
 0x379   : > { %1632 = vst [vmem:[%s3714_s18 + $0x20] sm:$0xff] %v1612_v22  ;;  %1640 = vst [vmem:[%s3714_s18 + $0x60] sm:$0xff] %v1620_v28  ;;  %v1555_v3 = vmax.f32 %v1470_v59, 0.0  ;;  %v1571_v52 = vmax.f32 %v1534_v60, 0.0  ;;  %v1473_v58 = vadd.f32 %v2308_v46, %v3673_v4  ;;  %v1537_v0 = vadd.f32 %v2324_v2, %v3673_v4  ;;  %v1464_v7 = vpop.f32.mrb[15].mxu0  ;;  %v1528_v8 = vpop.f32.mrb[15].mxu1  ;;  %2254 = vmatprep.subr.bf16.mxu0 (!%p2091_p13), %v1620_v28 }
 0x37a   : > { %v1553_v26 = vmax.f32 %v1462_v34, 0.0  ;;  %v1569_v36 = vmax.f32 %v1526_v40, 0.0  ;;  %v1465_v44 = vadd.f32 %v3673_v4, %v1464_v7  ;;  %v1529_v54 = vadd.f32 %v3673_v4, %v1528_v8  ;;  %2255 = vmatpush3.bf16.msra.mxu0 (!%p2091_p13), %v1612_v22 }
 0x37b   : > { %v1556_v10 = vmax.f32 %v1473_v58, 0.0  ;;  %v1572_v13 = vmax.f32 %v1537_v0, 0.0  ;;  %v1590_v14 = vsel %vm3678_vm0, %v1555_v3, %v1470_v59  ;;  %v1606_v15 = vsel %vm3678_vm0, %v1571_v52, %v1534_v60  ;;  %1647 = sbr.rel (%p2091_p13) target bundleno = 1125 (0x465), region = 88  ;;  %2256 = vmatprep.subr.bf16.mxu0 (!%p2091_p13), %v1621_v43 }
 0x37c   : > { %v1554_v16 = vmax.f32 %v1465_v44, 0.0  ;;  %v1570_v19 = vmax.f32 %v1529_v54, 0.0  ;;  %v1588_v20 = vsel %vm3678_vm0, %v1553_v26, %v1462_v34  ;;  %v1604_v4 = vsel %vm3678_vm0, %v1569_v36, %v1526_v40 }
 0x37d   : > { %v1591_v23 = vsel %vm3678_vm0, %v1556_v10, %v1473_v58  ;;  %v1607_v21 = vsel %vm3678_vm0, %v1572_v13, %v1537_v0 }
 0x37e   : > { %v1615_v27 = vpack.c.bf16 %v1591_v23, %v1590_v14  ;;  %v1623_v33 = vpack.c.bf16 %v1607_v21, %v1606_v15  ;;  %v1589_v24 = vsel %vm3678_vm0, %v1554_v16, %v1465_v44  ;;  %v1605_v29 = vsel %vm3678_vm0, %v1570_v19, %v1529_v54  ;;  %2257 = vmatpush3.bf16.msra.mxu0 (!%p2091_p13), %v3782_v35 }
 0x37f   : > { %v1614_v30 = vpack.c.bf16 %v1589_v24, %v1588_v20  ;;  %v1622_v39 = vpack.c.bf16 %v1605_v29, %v1604_v4 }
 0x380   : > { %1635 = vst [vmem:[%s3714_s18 + $0x38] sm:$0xff] %v1615_v27  ;;  %1643 = vst [vmem:[%s3714_s18 + $0x78] sm:$0xff] %v1623_v33 }
 0x381   : > { %1634 = vst [vmem:[%s3714_s18 + $0x30] sm:$0xff] %v1614_v30  ;;  %1642 = vst [vmem:[%s3714_s18 + $0x70] sm:$0xff] %v1622_v39  ;;  %2258 = vmatprep.subr.bf16.mxu0 (!%p2091_p13), %v1622_v39 }
 0x382   : > { %2259 = vmatpush3.bf16.msra.mxu0 %v1614_v30 }
 0x383   : > { %2260 = vmatprep.subr.bf16.mxu0 %v1623_v33 }
 0x386   : > { %2261 = vmatpush3.bf16.msra.mxu0 %v1615_v27 }
 0x389   : > { %1695 = vmatmul.mubr.bf16.vlgmr.msra.gmra.mrb[0].mxu0 %v2648_v18 }
 0x45c   : > { %v2262_v32 = vpop.f32.mrb[0].mxu0 }
 0x45d   : > { %v2263_v41 = vpop.f32.mrb[1].mxu0 }
 0x45e   : > { %v2264_v42 = vadd.f32 %v2263_v41, %v2262_v32  ;;  %v2265_v62 = vpop.f32.mrb[2].mxu0 }
 0x45f   : > { %v2266_v9 = vpop.f32.mrb[3].mxu0 }
 0x460   : > { %v1703_v6 = vadd.f32 %v2264_v42, %v1648_v37  ;;  %v2267_v51 = vadd.f32 %v2266_v9, %v2265_v62 }
 0x462   : > { %1705 = vst [vmem:[#allocation4] sm:$0xff] %v1703_v6  ;;  %v1704_v31 = vadd.f32 %v2267_v51, %v1649_v12 }
 0x464   : > { %1706 = vst [vmem:[#allocation4 + $0x8] sm:$0xff] %v1704_v31 }
 0x465 PF: > { %s4034_s23 = sld [smem:[#allocation23_spill]]  ;;  %s4035_s22 = sld [smem:[#allocation22_spill]] }
 0x46b   : > { %p1707_p1 = scmp.eq.s32.totalorder %s4034_s23, 2  ;;  %p1708_p5 = scmp.eq.s32.totalorder %s4035_s22, 1 }
 0x46d   : > { %p1709_p9 = pnand %p1708_p5, %p1707_p1 }
 0x46f   : > { %p1710_p7 = pneg %p1709_p9 }
 0x471   : > { %p1711_p8 = pnand %p1710_p7, %p1256_p12 }
 0x472   : > { %v2651_v57 = vld [vmem:[#allocation12] sm:$0xff] (!%p1711_p8)   ;;  %v2994_v63 = vmov (!%p1711_p8), 0.0   ;;  %v2652_v5 = vld [vmem:[#allocation12 + $0x8] sm:$0xff] (!%p1711_p8)   ;;  %vm2995_vm1 = vmmov (!%p1711_p8), 0   ;;  %v2653_v38 = vld [vmem:[#allocation12 + $0x10] sm:$0xff] (!%p1711_p8)   ;;  %s4037_s7 = sld [smem:[#allocation35_spill]] (!%p1711_p8) }
 0x473   : > { %1714 = sbr.rel (%p1711_p8) target bundleno = 1388 (0x56c), region = 92  ;;  %2325 = vmatprep.subr.bf16.mxu0 (!%p1711_p8), %v2994_v63  ;;  %2341 = vmatprep.mubr.msk.bf16.mxu0 (!%p1711_p8), %vm2995_vm1, %v2994_v63  ;;  %v2654_v11 = vld [vmem:[#allocation12 + $0x18] sm:$0xff] (!%p1711_p8)   ;;  %v2655_v17 = vld [vmem:[#allocation12 + $0x20] sm:$0xff] (!%p1711_p8)   ;;  %v2656_v25 = vld [vmem:[#allocation12 + $0x28] sm:$0xff] (!%p1711_p8)  }
 0x474   : > { %2326 = vmatpush3.bf16.msra.mxu0 (!%p1711_p8), %v2651_v57  ;;  %v2657_v47 = vld [vmem:[#allocation12 + $0x30] sm:$0xff] (!%p1711_p8)   ;;  %v2658_v48 = vld [vmem:[#allocation12 + $0x38] sm:$0xff] (!%p1711_p8)  }
 0x475   : > { %2327 = vmatprep.subr.bf16.mxu0 (!%p1711_p8), %v2994_v63  ;;  %v1715_v49 = vld [vmem:[#allocation4] sm:$0xff] (!%p1711_p8)  ;;  %v1716_v35 = vld [vmem:[#allocation4 + $0x8] sm:$0xff] (!%p1711_p8) }
 0x476   : > { %v1717_v43 = vpack.c.bf16 (!%p1711_p8), %v1716_v35, %v1715_v49 }
 0x478   : > { %2328 = vmatpush3.bf16.msra.mxu0 (!%p1711_p8), %v2652_v5  ;;  %v2094_v50 = vld [vmem:[%s4037_s7] ss:$0 sm:$0xff] (!%p1711_p8) }
 0x479   : > { %2329 = vmatprep.subr.bf16.mxu0 (!%p1711_p8), %v2994_v63 }
 0x47c   : > { %2330 = vmatpush3.bf16.msra.mxu0 %v2653_v38 }
 0x47d   : > { %2331 = vmatprep.subr.bf16.mxu0 %v2994_v63 }
 0x480   : > { %2332 = vmatpush3.bf16.msra.mxu0 %v2654_v11 }
 0x481   : > { %2333 = vmatprep.subr.bf16.mxu0 %v2994_v63 }
 0x484   : > { %2334 = vmatpush3.bf16.msra.mxu0 %v2655_v17 }
 0x485   : > { %2335 = vmatprep.subr.bf16.mxu0 %v2994_v63 }
 0x488   : > { %2336 = vmatpush3.bf16.msra.mxu0 %v2656_v25 }
 0x489   : > { %2337 = vmatprep.subr.bf16.mxu0 %v2994_v63 }
 0x48c   : > { %2338 = vmatpush3.bf16.msra.mxu0 %v2657_v47 }
 0x48d   : > { %2339 = vmatprep.subr.bf16.mxu0 %v2994_v63 }
 0x490   : > { %2340 = vmatpush3.bf16.msra.mxu0 %v2658_v48 }
 0x493   : > { %2342 = vmatmul.mubr.bf16.vlgmr.msra.gmra.mrb[0].mxu0 %v1717_v43 }
 0x566   : > { %v1823_v53 = vpop.f32.mrb[0].mxu0 }
 0x567   : > { %v1824_v55 = vadd.f32 %v2094_v50, %v1823_v53  ;;  %v2343_v56 = vpop.f32.mrb[1].mxu0 }
 0x568   : > { %v1826_v22 = vpop.f32.mrb[2].mxu0 }
 0x569   : > { %1830 = vst [vmem:[#allocation13] sm:$0xff] %v1824_v55  ;;  %v1827_v28 = vadd.f32 %v2094_v50, %v1826_v22  ;;  %v2344_v59 = vpop.f32.mrb[3].mxu0 }
 0x56b   : > { %1831 = vst [vmem:[#allocation13 + $0x8] sm:$0xff] %v1827_v28 }
 0x56c PF: > { %p2417_p10 = scmp.eq.s32.totalorder %s3209_s20, 11  ;;  %s2996_s3 = smov [#allocation13]  }
 0x56d   : > { %s1838_s15 = sshll.u32 %s2996_s3, 4  ;;  %s1839_s15 = int_to_ptr.vmem [resolvable:$true] %s1838_s15 }
 0x56e   : > { %s2805_s1 = scalar_lea.vmem %s1839_s15, 256  ;;  %p2812_p2 = scmp.lt.s32.totalorder %s1839_s15, %s1839_s15 }
 0x56f   : > { %p2806_p6 = scmp.ne.s32.totalorder %s1839_s15, %s2805_s1  ;;  %p2813_p4 = scmp.lt.s32.totalorder %s2805_s1, %s2805_s1 }
 0x571   : > { %p2807_p11 = pnand %p2806_p6, %p2417_p10  ;;  %p2814_p12 = por %p2813_p4, %p2812_p2 }
 0x573   : > { %p2808_p0 = pneg %p2807_p11 }
 0x575   : > { %p2815_p3 = pnand %p2814_p12, %p2808_p0 }
 0x577   : > { %2818 = shalt.err (!%p2815_p3)
}
 0x578   : > { %s4038_s17 = sld [smem:[#allocation36_spill]] }
 0x57e   : > { %s2819_s12 = scalar_lea.hbm %s4038_s17, 256 }
 0x57f   : > { %p2820_p13 = scmp.ne.s32.totalorder %s4038_s17, %s2819_s12  ;;  %p2825_p9 = scmp.lt.u32.totalorder %s2819_s12, %s4038_s17 }
 0x581   : > { %p2821_p1 = pnand %p2820_p13, %p2417_p10 }
 0x583   : > { %p2822_p5 = pneg %p2821_p1 }
 0x585   : > { %p2827_p7 = pnand %p2825_p9, %p2822_p5 }
 0x587   : > { %2830 = shalt.err (!%p2827_p7)
}
 0x588   : > { %s2997_s18 = smov 128   ;;  %s2998_s21 = smov 8  }
 0x589   : > { %2392 = dma.vmem_to_hbm [thread:$0]  (%p2417_p10), %s1839_s15, 256, %s4038_s17, [#allocation7], %s2997_s18, %s2997_s18, %s2998_s21  }
 0x58a   : > { %2916 = dma.done.wait (%p2417_p10), [#allocation7], 256  }
 0x58b   : > { %2918 = vsyncadd (%p2417_p10), [#allocation7], 4294967040 }
 0x58c PF: > { %s22_s16 = sadd.s32 1, %s2981_s16   ;;  %s4040_s19 = sld [smem:[#allocation20_spill]] }
 0x58d   : > { %p3866_p8 = scmp.ge.s32.totalorder %s22_s16, 14   ;;  %s4041_s10 = sld [smem:[#allocation24_spill]] }
 0x58e   : > { %s4042_s12 = sld [smem:[#allocation25_spill]]  ;;  %s4043_s20 = sld [smem:[#allocation26_spill]] }
 0x58f   : > { %s4044_s0 = sld [smem:[#allocation27_spill]]  ;;  %s4045_s15 = sld [smem:[#allocation28_spill]] }
 0x590   : > { %s4046_s24 = smov %s2925_s25  ;;  %s4048_s26 = smov %s3374_s30 }
 0x591   : > { %s4049_s27 = smov %s2937_s28  ;;  %s4050_s28 = smov %s2941_s29 }
 0x592   : > { %s4047_s25 = smov %s4040_s19  ;;  %s4051_s29 = smov %s3301_s13 }
 0x593   : > { %s4052_s30 = smov %s2949_s8  ;;  %s4053_s8 = smov %s2953_s9 }
 0x594   : > { %s4054_s9 = smov %s3156_s11  ;;  %s4055_s11 = smov %s2973_s14 }
 0x595   : > { %s4056_s13 = smov %s4043_s20  ;;  %s4057_s14 = smov %s4044_s0 }
 0x596   :  { %21 = sbr.rel (!%p3866_p8) target bundleno = 20 (0x14), region = 144 }
 0x59d   :  { %1854 = vsyncpa [#allocation6], 1 }
 0x59e   :  { %1856 = vsyncpa [#allocation6 + $0x1], 1 }
 0x59f   :  { %1857 = vsyncpa [#allocation9], 1 }
 0x5a0   :  { %1858 = vsyncpa [#allocation7], 1 }
 0x5a1   :  { %1860 = vsyncpa [#allocation7 + $0x1], 1 }

</bundles_post_ra>
